<compile_context>
chip_gen: v5e
topology: v5e:2x2
jax: 0.10.0
libtpu: 0.0.40
codegen_flags: <defaults>
</compile_context>

<pallas_src>
import functools

import jax
import jax.numpy as jnp
from jax.experimental import pallas as pl
from jax.experimental.pallas import tpu as pltpu


# -----------------------------------------------------------------------------
# 1. CharCNN kernel: sum over K shifted-slice matmuls + bias + ReLU + max-over-time
# -----------------------------------------------------------------------------
def charcnn_kernel(emb_ref, w_ref, b_ref, o_ref, *, K, Lout):
    # emb_ref: (L, TN, Cc) bf16   (time-of-char major so emb_ref[i] is lane-natural)
    # w_ref  : (K, Cc, Ce) bf16   conv taps
    # b_ref  : (1, Ce)     f32
    # o_ref  : (TN, Ce)    f32
    L = emb_ref.shape[0]
    xs = [emb_ref[i] for i in range(L)]          # (TN, Cc) each, loaded once
    taps = [w_ref[j] for j in range(K)]          # (Cc, Ce) each
    b = b_ref[...]                               # (1, Ce)

    m = None
    for p in range(Lout):
        acc = jnp.dot(xs[p], taps[0], preferred_element_type=jnp.float32)
        for j in range(1, K):
            acc = acc + jnp.dot(xs[p + j], taps[j],
                                preferred_element_type=jnp.float32)
        y = jnp.maximum(acc + b, 0.0)            # conv + bias + ReLU at position p
        m = y if m is None else jnp.maximum(m, y)
    o_ref[...] = m                               # max-over-time


def char_cnn(chars_lt, c_table, conv_w, conv_b, *, K):
    """chars_lt: (L, N) int32 (char-position major) -> (N, c_embed) f32."""
    L, N = chars_lt.shape
    Cc = c_table.shape[1]
    Ce = conv_w.shape[-1]
    Lout = L - K + 1

    emb = jnp.take(c_table, chars_lt, axis=0).astype(jnp.bfloat16)   # (L, N, Cc)
    w = conv_w.astype(jnp.bfloat16)                                  # (K, Cc, Ce)
    b = conv_b.astype(jnp.float32)                                   # (1, Ce)

    # Row tile over N: full dim if small, else a multiple of 8 that keeps the
    # double-buffered block far below the scoped VMEM limit on all generations.
    tn = N if N <= 256 else 256
    grid = (pl.cdiv(N, tn),)

    kernel = functools.partial(charcnn_kernel, K=K, Lout=Lout)
    out = pl.pallas_call(
        kernel,
        out_shape=jax.ShapeDtypeStruct((N, Ce), jnp.float32),
        grid=grid,
        in_specs=[
            pl.BlockSpec((L, tn, Cc), lambda i: (0, i, 0)),
            pl.BlockSpec((K, Cc, Ce), lambda i: (0, 0, 0)),
            pl.BlockSpec((1, Ce), lambda i: (0, 0)),
        ],
        out_specs=pl.BlockSpec((tn, Ce), lambda i: (i, 0)),
        compiler_params=pltpu.CompilerParams(
            dimension_semantics=("parallel",)),       # shards across TCs on v7x
    )(emb, w, b)
    return out                                        # (N, Ce)


# -----------------------------------------------------------------------------
# 2. Hoisted input-side GRU GEMM: gi = x @ W_ih + b_ih for both directions
# -----------------------------------------------------------------------------
def proj_kernel(x_ref, wf_ref, bf_ref, wb_ref, bb_ref, gif_ref, gib_ref):
    # x_ref: (TM, E) bf16 ; w*: (E, 3H) bf16 ; b*: (1, 3H) f32 ; outs: (TM, 3H) f32
    x = x_ref[...]
    gif_ref[...] = (jnp.dot(x, wf_ref[...], preferred_element_type=jnp.float32)
                    + bf_ref[...])
    gib_ref[...] = (jnp.dot(x, wb_ref[...], preferred_element_type=jnp.float32)
                    + bb_ref[...])


def gru_input_proj(x, wih_f, bih_f, wih_b, bih_b):
    """x: (N, E) f32 -> (gi_f, gi_b): (N, 3H) f32 each (one large GEMM, M=N=T*B)."""
    N, E = x.shape
    G = wih_f.shape[1]

    xb = x.astype(jnp.bfloat16)
    wf = wih_f.astype(jnp.bfloat16)
    wb = wih_b.astype(jnp.bfloat16)
    bf = bih_f.astype(jnp.float32)
    bb = bih_b.astype(jnp.float32)

    tm = N if N <= 512 else 512
    grid = (pl.cdiv(N, tm),)

    gi_f, gi_b = pl.pallas_call(
        proj_kernel,
        out_shape=(jax.ShapeDtypeStruct((N, G), jnp.float32),
                   jax.ShapeDtypeStruct((N, G), jnp.float32)),
        grid=grid,
        in_specs=[
            pl.BlockSpec((tm, E), lambda i: (i, 0)),
            pl.BlockSpec((E, G), lambda i: (0, 0)),
            pl.BlockSpec((1, G), lambda i: (0, 0)),
            pl.BlockSpec((E, G), lambda i: (0, 0)),
            pl.BlockSpec((1, G), lambda i: (0, 0)),
        ],
        out_specs=(pl.BlockSpec((tm, G), lambda i: (i, 0)),
                   pl.BlockSpec((tm, G), lambda i: (i, 0))),
        compiler_params=pltpu.CompilerParams(
            dimension_semantics=("parallel",)),
    )(xb, wf, bf, wb, bb)
    return gi_f, gi_b


# -----------------------------------------------------------------------------
# 3. BiGRU recurrence: ts timesteps per sequential grid step, h carried in VMEM
# -----------------------------------------------------------------------------
def bigru_kernel(gif_ref, gib_ref, whhf_ref, bhhf_ref, whhb_ref, bhhb_ref,
                 of_ref, ob_ref, hf_sc, hb_sc, *, ts):
    step = pl.program_id(0)

    @pl.when(step == 0)
    def _():
        hf_sc[...] = jnp.zeros_like(hf_sc)
        hb_sc[...] = jnp.zeros_like(hb_sc)

    H = hf_sc.shape[-1]
    whh_f = whhf_ref[...]
    bhh_f = bhhf_ref[...]
    whh_b = whhb_ref[...]
    bhh_b = bhhb_ref[...]
    hf = hf_sc[...]
    hb = hb_sc[...]

    # NOTE: with toy H=32 the gate slices below cut inside one 128-lane vreg;
    # for realistic H (multiple of 128) they are free aligned views.
    def cell(gi, h, whh, bhh):
        gh = jnp.dot(h, whh, preferred_element_type=jnp.float32) + bhh
        r = jax.nn.sigmoid(gi[:, 0:H] + gh[:, 0:H])
        z = jax.nn.sigmoid(gi[:, H:2 * H] + gh[:, H:2 * H])
        n = jnp.tanh(gi[:, 2 * H:3 * H] + r * gh[:, 2 * H:3 * H])
        return (1.0 - z) * n + z * h

    # Statically unrolled inner time loop (ts small & fixed).
    for s in range(ts):
        hf = cell(gif_ref[s], hf, whh_f, bhh_f)          # forward: time step*ts+s
        of_ref[s] = hf
        hb = cell(gib_ref[ts - 1 - s], hb, whh_b, bhh_b)  # backward: reversed order
        ob_ref[ts - 1 - s] = hb

    hf_sc[...] = hf
    hb_sc[...] = hb


def bigru_recurrence(gi_f, gi_b, whh_f, bhh_f, whh_b, bhh_b, *, ts):
    """gi_f, gi_b: (T, B, 3H) f32 -> (out_f, out_b): (T, B, H) f32 each."""
    T, B, G = gi_f.shape
    H = G // 3
    assert T % ts == 0, "ts must divide T"
    nblk = T // ts

    kernel = functools.partial(bigru_kernel, ts=ts)
    out_f, out_b = pl.pallas_call(
        kernel,
        out_shape=(jax.ShapeDtypeStruct((T, B, H), jnp.float32),
                   jax.ShapeDtypeStruct((T, B, H), jnp.float32)),
        grid=(nblk,),
        in_specs=[
            pl.BlockSpec((ts, B, G), lambda i: (i, 0, 0)),               # gi fwd
            pl.BlockSpec((ts, B, G), lambda i: (nblk - 1 - i, 0, 0)),    # gi bwd
            pl.BlockSpec((H, G), lambda i: (0, 0)),
            pl.BlockSpec((1, G), lambda i: (0, 0)),
            pl.BlockSpec((H, G), lambda i: (0, 0)),
            pl.BlockSpec((1, G), lambda i: (0, 0)),
        ],
        out_specs=(pl.BlockSpec((ts, B, H), lambda i: (i, 0, 0)),
                   pl.BlockSpec((ts, B, H), lambda i: (nblk - 1 - i, 0, 0))),
        scratch_shapes=[pltpu.VMEM((B, H), jnp.float32),
                        pltpu.VMEM((B, H), jnp.float32)],
        compiler_params=pltpu.CompilerParams(
            dimension_semantics=("arbitrary",)),      # true recurrence: sequential
    )(gi_f, gi_b, whh_f, bhh_f, whh_b, bhh_b)
    return out_f, out_b


# -----------------------------------------------------------------------------
# Parameters + forward glue
# -----------------------------------------------------------------------------
def init_params(key, w_size, w_embed, c_size, c_char, c_embed, hidden_dim, K,
                pad_idx):
    ks = jax.random.split(key, 12)
    s = 0.1
    w_table = s * jax.random.normal(ks[0], (w_size, w_embed), jnp.float32)
    w_table = w_table.at[pad_idx].set(0.0)                 # nn.Embedding padding_idx
    c_table = s * jax.random.normal(ks[1], (c_size, c_char), jnp.float32)
    c_table = c_table.at[pad_idx].set(0.0)
    conv_w = s * jax.random.normal(ks[2], (K, c_char, c_embed), jnp.float32)
    conv_b = s * jax.random.normal(ks[3], (1, c_embed), jnp.float32)

    E = w_embed + c_embed
    H = hidden_dim
    g = 1.0 / jnp.sqrt(jnp.float32(H))
    names = ["wih_f", "whh_f", "bih_f", "bhh_f", "wih_b", "whh_b", "bih_b", "bhh_b"]
    shapes = [(E, 3 * H), (H, 3 * H), (1, 3 * H), (1, 3 * H),
              (E, 3 * H), (H, 3 * H), (1, 3 * H), (1, 3 * H)]
    gru = {n: g * jax.random.normal(k, sh, jnp.float32)
           for n, k, sh in zip(names, ks[4:12], shapes)}
    return dict(w_table=w_table, c_table=c_table, conv_w=conv_w, conv_b=conv_b,
                **gru)


@functools.partial(jax.jit, static_argnames=("K", "pad_idx", "ts"))
def input_embedding_forward(params, words, chars, *, K, pad_idx, ts):
    B, T = words.shape
    L = chars.shape[-1]
    N = B * T

    # mask = words.eq(pad_idx).unsqueeze(-1); applied ONCE at the end (keep-mask)
    keep = (words != pad_idx).astype(jnp.float32)[:, :, None]       # (B, T, 1)

    # Cheap integer transposes so everything downstream is time-major (no float
    # tensor transposes on the way in).
    words_t = words.T                                               # (T, B)
    chars_t = jnp.transpose(chars, (1, 0, 2))                       # (T, B, L)
    chars_lt = chars_t.reshape(N, L).T                              # (L, N)

    # e_w = w_embed(words); detach + dropout are identity in the forward pass.
    e_w = jnp.take(params["w_table"], words_t.reshape(-1), axis=0)  # (N, We)

    # e_c = CharCNN(chars)  (conv + ReLU + max in Pallas)
    e_c = char_cnn(chars_lt, params["c_table"], params["conv_w"],
                   params["conv_b"], K=K)                           # (N, Ce)

    embed = jnp.concatenate([e_w, e_c], axis=-1)                    # (N, E)

    # Hoisted x @ W_ih for both GRU directions: one big GEMM over all timesteps.
    gi_f, gi_b = gru_input_proj(embed, params["wih_f"], params["bih_f"],
                                params["wih_b"], params["bih_b"])   # (N, 3H) each
    G = gi_f.shape[-1]
    gi_f = gi_f.reshape(T, B, G)                                    # free reshapes
    gi_b = gi_b.reshape(T, B, G)

    # Sequential recurrence (only h @ W_hh + gates per timestep).
    out_f, out_b = bigru_recurrence(gi_f, gi_b,
                                    params["whh_f"], params["bhh_f"],
                                    params["whh_b"], params["bhh_b"], ts=ts)

    # concat + back to batch-major + masked_fill (fused by XLA into one pass);
    # final dropout is identity in eval mode.
    out = jnp.concatenate([out_f, out_b], axis=-1)                  # (T, B, 2H)
    out = jnp.transpose(out, (1, 0, 2)) * keep                      # (B, T, 2H)
    # TODO(synk): training-mode dropout (three nn.Dropout sites) is treated as
    # identity; no in-kernel RNG dropout is implemented.
    return out


if __name__ == "__main__":
    # small deterministic config
    B, T, L = 2, 8, 8
    w_size, w_embed = 50, 24
    c_size, c_embed = 30, 16
    hidden_dim = 32
    K = 5
    pad_idx = 1
    ts = 4                      # timesteps per sequential grid step (divides T)

    key = jax.random.PRNGKey(0)
    kp, kw, kc = jax.random.split(key, 3)
    params = init_params(kp, w_size, w_embed, c_size, 20, c_embed, hidden_dim,
                         K, pad_idx)

    words = jax.random.randint(kw, (B, T), 0, w_size, dtype=jnp.int32)
    words = words.at[0, -1].set(pad_idx)            # exercise the pad mask
    words = words.at[1, -2:].set(pad_idx)
    chars = jax.random.randint(kc, (B, T, L), 0, c_size, dtype=jnp.int32)

    out = input_embedding_forward(params, words, chars,
                                  K=K, pad_idx=pad_idx, ts=ts)
    out = jax.block_until_ready(out)
    assert out.shape == (B, T, 2 * hidden_dim), out.shape
    assert bool(jnp.all(out[0, -1] == 0.0))         # pad positions zeroed
    print("KERNEL_OK")
</pallas_src>

<mosaic_0001>
module attributes {stable_mosaic.version = 11 : i64} {
  func.func @charcnn_kernel(%arg0: i32, %arg1: memref<8x16x20xbf16, #tpu.memory_space<vmem>>, %arg2: memref<5x20x16xbf16, #tpu.memory_space<vmem>>, %arg3: memref<1x16xf32, #tpu.memory_space<vmem>>, %arg4: memref<16x16xf32, #tpu.memory_space<vmem>>) attributes {dimension_semantics = [#tpu.dimension_semantics<parallel>], iteration_bounds = array<i64: 1>, scalar_prefetch = 0 : i64, scratch_operands = 0 : i64, tpu.core_type = #tpu.core_type<tc>, window_params = [{transform_indices = @transform_0, window_bounds = array<i64: 8, 16, 20>}, {pipeline_mode = #tpu.pipeline_mode<synchronous>, transform_indices = @transform_1, window_bounds = array<i64: 5, 20, 16>}, {pipeline_mode = #tpu.pipeline_mode<synchronous>, transform_indices = @transform_2, window_bounds = array<i64: 1, 16>}, {transform_indices = @transform_3, window_bounds = array<i64: 16, 16>}]} {
    %c0 = arith.constant 0 : index
    %c0_0 = arith.constant 0 : index
    %c0_1 = arith.constant 0 : index
    %0 = vector.load %arg1[%c0, %c0_0, %c0_1] : memref<8x16x20xbf16, #tpu.memory_space<vmem>>, vector<1x16x20xbf16>
    %1 = vector.shape_cast %0 : vector<1x16x20xbf16> to vector<16x20xbf16>
    %c1 = arith.constant 1 : index
    %c0_2 = arith.constant 0 : index
    %c0_3 = arith.constant 0 : index
    %2 = vector.load %arg1[%c1, %c0_2, %c0_3] : memref<8x16x20xbf16, #tpu.memory_space<vmem>>, vector<1x16x20xbf16>
    %3 = vector.shape_cast %2 : vector<1x16x20xbf16> to vector<16x20xbf16>
    %c2 = arith.constant 2 : index
    %c0_4 = arith.constant 0 : index
    %c0_5 = arith.constant 0 : index
    %4 = vector.load %arg1[%c2, %c0_4, %c0_5] : memref<8x16x20xbf16, #tpu.memory_space<vmem>>, vector<1x16x20xbf16>
    %5 = vector.shape_cast %4 : vector<1x16x20xbf16> to vector<16x20xbf16>
    %c3 = arith.constant 3 : index
    %c0_6 = arith.constant 0 : index
    %c0_7 = arith.constant 0 : index
    %6 = vector.load %arg1[%c3, %c0_6, %c0_7] : memref<8x16x20xbf16, #tpu.memory_space<vmem>>, vector<1x16x20xbf16>
    %7 = vector.shape_cast %6 : vector<1x16x20xbf16> to vector<16x20xbf16>
    %c4 = arith.constant 4 : index
    %c0_8 = arith.constant 0 : index
    %c0_9 = arith.constant 0 : index
    %8 = vector.load %arg1[%c4, %c0_8, %c0_9] : memref<8x16x20xbf16, #tpu.memory_space<vmem>>, vector<1x16x20xbf16>
    %9 = vector.shape_cast %8 : vector<1x16x20xbf16> to vector<16x20xbf16>
    %c5 = arith.constant 5 : index
    %c0_10 = arith.constant 0 : index
    %c0_11 = arith.constant 0 : index
    %10 = vector.load %arg1[%c5, %c0_10, %c0_11] : memref<8x16x20xbf16, #tpu.memory_space<vmem>>, vector<1x16x20xbf16>
    %11 = vector.shape_cast %10 : vector<1x16x20xbf16> to vector<16x20xbf16>
    %c6 = arith.constant 6 : index
    %c0_12 = arith.constant 0 : index
    %c0_13 = arith.constant 0 : index
    %12 = vector.load %arg1[%c6, %c0_12, %c0_13] : memref<8x16x20xbf16, #tpu.memory_space<vmem>>, vector<1x16x20xbf16>
    %13 = vector.shape_cast %12 : vector<1x16x20xbf16> to vector<16x20xbf16>
    %c7 = arith.constant 7 : index
    %c0_14 = arith.constant 0 : index
    %c0_15 = arith.constant 0 : index
    %14 = vector.load %arg1[%c7, %c0_14, %c0_15] : memref<8x16x20xbf16, #tpu.memory_space<vmem>>, vector<1x16x20xbf16>
    %15 = vector.shape_cast %14 : vector<1x16x20xbf16> to vector<16x20xbf16>
    %c0_16 = arith.constant 0 : index
    %c0_17 = arith.constant 0 : index
    %c0_18 = arith.constant 0 : index
    %16 = vector.load %arg2[%c0_16, %c0_17, %c0_18] : memref<5x20x16xbf16, #tpu.memory_space<vmem>>, vector<1x20x16xbf16>
    %17 = vector.shape_cast %16 : vector<1x20x16xbf16> to vector<20x16xbf16>
    %c1_19 = arith.constant 1 : index
    %c0_20 = arith.constant 0 : index
    %c0_21 = arith.constant 0 : index
    %18 = vector.load %arg2[%c1_19, %c0_20, %c0_21] : memref<5x20x16xbf16, #tpu.memory_space<vmem>>, vector<1x20x16xbf16>
    %19 = vector.shape_cast %18 : vector<1x20x16xbf16> to vector<20x16xbf16>
    %c2_22 = arith.constant 2 : index
    %c0_23 = arith.constant 0 : index
    %c0_24 = arith.constant 0 : index
    %20 = vector.load %arg2[%c2_22, %c0_23, %c0_24] : memref<5x20x16xbf16, #tpu.memory_space<vmem>>, vector<1x20x16xbf16>
    %21 = vector.shape_cast %20 : vector<1x20x16xbf16> to vector<20x16xbf16>
    %c3_25 = arith.constant 3 : index
    %c0_26 = arith.constant 0 : index
    %c0_27 = arith.constant 0 : index
    %22 = vector.load %arg2[%c3_25, %c0_26, %c0_27] : memref<5x20x16xbf16, #tpu.memory_space<vmem>>, vector<1x20x16xbf16>
    %23 = vector.shape_cast %22 : vector<1x20x16xbf16> to vector<20x16xbf16>
    %c4_28 = arith.constant 4 : index
    %c0_29 = arith.constant 0 : index
    %c0_30 = arith.constant 0 : index
    %24 = vector.load %arg2[%c4_28, %c0_29, %c0_30] : memref<5x20x16xbf16, #tpu.memory_space<vmem>>, vector<1x20x16xbf16>
    %25 = vector.shape_cast %24 : vector<1x20x16xbf16> to vector<20x16xbf16>
    %c0_31 = arith.constant 0 : index
    %c0_32 = arith.constant 0 : index
    %26 = vector.load %arg3[%c0_31, %c0_32] : memref<1x16xf32, #tpu.memory_space<vmem>>, vector<1x16xf32>
    %cst = arith.constant dense<0.000000e+00> : vector<16x16xf32>
    %27 = tpu.matmul %1, %17, %cst {dimension_numbers = #tpu.dot_dimension_numbers<[1], [0], [0], [1], [0, 0, 1, 1], [], []>} : vector<16x20xbf16>, vector<20x16xbf16>, vector<16x16xf32> -> vector<16x16xf32>
    %cst_33 = arith.constant dense<0.000000e+00> : vector<16x16xf32>
    %28 = tpu.matmul %3, %19, %cst_33 {dimension_numbers = #tpu.dot_dimension_numbers<[1], [0], [0], [1], [0, 0, 1, 1], [], []>} : vector<16x20xbf16>, vector<20x16xbf16>, vector<16x16xf32> -> vector<16x16xf32>
    %29 = arith.addf %27, %28 : vector<16x16xf32>
    %cst_34 = arith.constant dense<0.000000e+00> : vector<16x16xf32>
    %30 = tpu.matmul %5, %21, %cst_34 {dimension_numbers = #tpu.dot_dimension_numbers<[1], [0], [0], [1], [0, 0, 1, 1], [], []>} : vector<16x20xbf16>, vector<20x16xbf16>, vector<16x16xf32> -> vector<16x16xf32>
    %31 = arith.addf %29, %30 : vector<16x16xf32>
    %cst_35 = arith.constant dense<0.000000e+00> : vector<16x16xf32>
    %32 = tpu.matmul %7, %23, %cst_35 {dimension_numbers = #tpu.dot_dimension_numbers<[1], [0], [0], [1], [0, 0, 1, 1], [], []>} : vector<16x20xbf16>, vector<20x16xbf16>, vector<16x16xf32> -> vector<16x16xf32>
    %33 = arith.addf %31, %32 : vector<16x16xf32>
    %cst_36 = arith.constant dense<0.000000e+00> : vector<16x16xf32>
    %34 = tpu.matmul %9, %25, %cst_36 {dimension_numbers = #tpu.dot_dimension_numbers<[1], [0], [0], [1], [0, 0, 1, 1], [], []>} : vector<16x20xbf16>, vector<20x16xbf16>, vector<16x16xf32> -> vector<16x16xf32>
    %35 = arith.addf %33, %34 : vector<16x16xf32>
    %36 = vector.broadcast %26 : vector<1x16xf32> to vector<16x16xf32>
    %37 = arith.addf %35, %36 : vector<16x16xf32>
    %cst_37 = arith.constant 0.000000e+00 : f32
    %38 = vector.broadcast %cst_37 : f32 to vector<16x16xf32>
    %39 = arith.maximumf %37, %38 : vector<16x16xf32>
    %cst_38 = arith.constant dense<0.000000e+00> : vector<16x16xf32>
    %40 = tpu.matmul %3, %17, %cst_38 {dimension_numbers = #tpu.dot_dimension_numbers<[1], [0], [0], [1], [0, 0, 1, 1], [], []>} : vector<16x20xbf16>, vector<20x16xbf16>, vector<16x16xf32> -> vector<16x16xf32>
    %cst_39 = arith.constant dense<0.000000e+00> : vector<16x16xf32>
    %41 = tpu.matmul %5, %19, %cst_39 {dimension_numbers = #tpu.dot_dimension_numbers<[1], [0], [0], [1], [0, 0, 1, 1], [], []>} : vector<16x20xbf16>, vector<20x16xbf16>, vector<16x16xf32> -> vector<16x16xf32>
    %42 = arith.addf %40, %41 : vector<16x16xf32>
    %cst_40 = arith.constant dense<0.000000e+00> : vector<16x16xf32>
    %43 = tpu.matmul %7, %21, %cst_40 {dimension_numbers = #tpu.dot_dimension_numbers<[1], [0], [0], [1], [0, 0, 1, 1], [], []>} : vector<16x20xbf16>, vector<20x16xbf16>, vector<16x16xf32> -> vector<16x16xf32>
    %44 = arith.addf %42, %43 : vector<16x16xf32>
    %cst_41 = arith.constant dense<0.000000e+00> : vector<16x16xf32>
    %45 = tpu.matmul %9, %23, %cst_41 {dimension_numbers = #tpu.dot_dimension_numbers<[1], [0], [0], [1], [0, 0, 1, 1], [], []>} : vector<16x20xbf16>, vector<20x16xbf16>, vector<16x16xf32> -> vector<16x16xf32>
    %46 = arith.addf %44, %45 : vector<16x16xf32>
    %cst_42 = arith.constant dense<0.000000e+00> : vector<16x16xf32>
    %47 = tpu.matmul %11, %25, %cst_42 {dimension_numbers = #tpu.dot_dimension_numbers<[1], [0], [0], [1], [0, 0, 1, 1], [], []>} : vector<16x20xbf16>, vector<20x16xbf16>, vector<16x16xf32> -> vector<16x16xf32>
    %48 = arith.addf %46, %47 : vector<16x16xf32>
    %49 = vector.broadcast %26 : vector<1x16xf32> to vector<16x16xf32>
    %50 = arith.addf %48, %49 : vector<16x16xf32>
    %cst_43 = arith.constant 0.000000e+00 : f32
    %51 = vector.broadcast %cst_43 : f32 to vector<16x16xf32>
    %52 = arith.maximumf %50, %51 : vector<16x16xf32>
    %53 = arith.maximumf %39, %52 : vector<16x16xf32>
    %cst_44 = arith.constant dense<0.000000e+00> : vector<16x16xf32>
    %54 = tpu.matmul %5, %17, %cst_44 {dimension_numbers = #tpu.dot_dimension_numbers<[1], [0], [0], [1], [0, 0, 1, 1], [], []>} : vector<16x20xbf16>, vector<20x16xbf16>, vector<16x16xf32> -> vector<16x16xf32>
    %cst_45 = arith.constant dense<0.000000e+00> : vector<16x16xf32>
    %55 = tpu.matmul %7, %19, %cst_45 {dimension_numbers = #tpu.dot_dimension_numbers<[1], [0], [0], [1], [0, 0, 1, 1], [], []>} : vector<16x20xbf16>, vector<20x16xbf16>, vector<16x16xf32> -> vector<16x16xf32>
    %56 = arith.addf %54, %55 : vector<16x16xf32>
    %cst_46 = arith.constant dense<0.000000e+00> : vector<16x16xf32>
    %57 = tpu.matmul %9, %21, %cst_46 {dimension_numbers = #tpu.dot_dimension_numbers<[1], [0], [0], [1], [0, 0, 1, 1], [], []>} : vector<16x20xbf16>, vector<20x16xbf16>, vector<16x16xf32> -> vector<16x16xf32>
    %58 = arith.addf %56, %57 : vector<16x16xf32>
    %cst_47 = arith.constant dense<0.000000e+00> : vector<16x16xf32>
    %59 = tpu.matmul %11, %23, %cst_47 {dimension_numbers = #tpu.dot_dimension_numbers<[1], [0], [0], [1], [0, 0, 1, 1], [], []>} : vector<16x20xbf16>, vector<20x16xbf16>, vector<16x16xf32> -> vector<16x16xf32>
    %60 = arith.addf %58, %59 : vector<16x16xf32>
    %cst_48 = arith.constant dense<0.000000e+00> : vector<16x16xf32>
    %61 = tpu.matmul %13, %25, %cst_48 {dimension_numbers = #tpu.dot_dimension_numbers<[1], [0], [0], [1], [0, 0, 1, 1], [], []>} : vector<16x20xbf16>, vector<20x16xbf16>, vector<16x16xf32> -> vector<16x16xf32>
    %62 = arith.addf %60, %61 : vector<16x16xf32>
    %63 = vector.broadcast %26 : vector<1x16xf32> to vector<16x16xf32>
    %64 = arith.addf %62, %63 : vector<16x16xf32>
    %cst_49 = arith.constant 0.000000e+00 : f32
    %65 = vector.broadcast %cst_49 : f32 to vector<16x16xf32>
    %66 = arith.maximumf %64, %65 : vector<16x16xf32>
    %67 = arith.maximumf %53, %66 : vector<16x16xf32>
    %cst_50 = arith.constant dense<0.000000e+00> : vector<16x16xf32>
    %68 = tpu.matmul %7, %17, %cst_50 {dimension_numbers = #tpu.dot_dimension_numbers<[1], [0], [0], [1], [0, 0, 1, 1], [], []>} : vector<16x20xbf16>, vector<20x16xbf16>, vector<16x16xf32> -> vector<16x16xf32>
    %cst_51 = arith.constant dense<0.000000e+00> : vector<16x16xf32>
    %69 = tpu.matmul %9, %19, %cst_51 {dimension_numbers = #tpu.dot_dimension_numbers<[1], [0], [0], [1], [0, 0, 1, 1], [], []>} : vector<16x20xbf16>, vector<20x16xbf16>, vector<16x16xf32> -> vector<16x16xf32>
    %70 = arith.addf %68, %69 : vector<16x16xf32>
    %cst_52 = arith.constant dense<0.000000e+00> : vector<16x16xf32>
    %71 = tpu.matmul %11, %21, %cst_52 {dimension_numbers = #tpu.dot_dimension_numbers<[1], [0], [0], [1], [0, 0, 1, 1], [], []>} : vector<16x20xbf16>, vector<20x16xbf16>, vector<16x16xf32> -> vector<16x16xf32>
    %72 = arith.addf %70, %71 : vector<16x16xf32>
    %cst_53 = arith.constant dense<0.000000e+00> : vector<16x16xf32>
    %73 = tpu.matmul %13, %23, %cst_53 {dimension_numbers = #tpu.dot_dimension_numbers<[1], [0], [0], [1], [0, 0, 1, 1], [], []>} : vector<16x20xbf16>, vector<20x16xbf16>, vector<16x16xf32> -> vector<16x16xf32>
    %74 = arith.addf %72, %73 : vector<16x16xf32>
    %cst_54 = arith.constant dense<0.000000e+00> : vector<16x16xf32>
    %75 = tpu.matmul %15, %25, %cst_54 {dimension_numbers = #tpu.dot_dimension_numbers<[1], [0], [0], [1], [0, 0, 1, 1], [], []>} : vector<16x20xbf16>, vector<20x16xbf16>, vector<16x16xf32> -> vector<16x16xf32>
    %76 = arith.addf %74, %75 : vector<16x16xf32>
    %77 = vector.broadcast %26 : vector<1x16xf32> to vector<16x16xf32>
    %78 = arith.addf %76, %77 : vector<16x16xf32>
    %cst_55 = arith.constant 0.000000e+00 : f32
    %79 = vector.broadcast %cst_55 : f32 to vector<16x16xf32>
    %80 = arith.maximumf %78, %79 : vector<16x16xf32>
    %81 = arith.maximumf %67, %80 : vector<16x16xf32>
    %c0_56 = arith.constant 0 : index
    %c0_57 = arith.constant 0 : index
    %82 = vector.load %arg4[%c0_56, %c0_57] : memref<16x16xf32, #tpu.memory_space<vmem>>, vector<16x16xf32>
    tpu.vector_store %arg4[%c0_56, %c0_57], %81 {strides = array<i32>} : memref<16x16xf32, #tpu.memory_space<vmem>>, vector<16x16xf32>,
    return
  }
  func.func @transform_0(%arg0: i32) -> (i32, i32, i32) {
    %c0_i32 = arith.constant 0 : i32
    %c0_i32_0 = arith.constant 0 : i32
    %c0_i32_1 = arith.constant 0 : i32
    return %c0_i32, %arg0, %c0_i32_0 : i32, i32, i32
  }
  func.func @transform_1(%arg0: i32) -> (i32, i32, i32) {
    %c0_i32 = arith.constant 0 : i32
    %c0_i32_0 = arith.constant 0 : i32
    %c0_i32_1 = arith.constant 0 : i32
    %c0_i32_2 = arith.constant 0 : i32
    return %c0_i32, %c0_i32_0, %c0_i32_1 : i32, i32, i32
  }
  func.func @transform_2(%arg0: i32) -> (i32, i32) {
    %c0_i32 = arith.constant 0 : i32
    %c0_i32_0 = arith.constant 0 : i32
    %c0_i32_1 = arith.constant 0 : i32
    return %c0_i32, %c0_i32_0 : i32, i32
  }
  func.func @transform_3(%arg0: i32) -> (i32, i32) {
    %c0_i32 = arith.constant 0 : i32
    %c0_i32_0 = arith.constant 0 : i32
    return %arg0, %c0_i32 : i32, i32
  }
}

module attributes {stable_mosaic.version = 11 : i64} {
  func.func @proj_kernel(%arg0: i32, %arg1: memref<16x40xbf16, #tpu.memory_space<vmem>>, %arg2: memref<40x96xbf16, #tpu.memory_space<vmem>>, %arg3: memref<1x96xf32, #tpu.memory_space<vmem>>, %arg4: memref<40x96xbf16, #tpu.memory_space<vmem>>, %arg5: memref<1x96xf32, #tpu.memory_space<vmem>>, %arg6: memref<16x96xf32, #tpu.memory_space<vmem>>, %arg7: memref<16x96xf32, #tpu.memory_space<vmem>>) attributes {dimension_semantics = [#tpu.dimension_semantics<parallel>], iteration_bounds = array<i64: 1>, scalar_prefetch = 0 : i64, scratch_operands = 0 : i64, tpu.core_type = #tpu.core_type<tc>, window_params = [{transform_indices = @transform_0, window_bounds = array<i64: 16, 40>}, {pipeline_mode = #tpu.pipeline_mode<synchronous>, transform_indices = @transform_1, window_bounds = array<i64: 40, 96>}, {pipeline_mode = #tpu.pipeline_mode<synchronous>, transform_indices = @transform_2, window_bounds = array<i64: 1, 96>}, {pipeline_mode = #tpu.pipeline_mode<synchronous>, transform_indices = @transform_3, window_bounds = array<i64: 40, 96>}, {pipeline_mode = #tpu.pipeline_mode<synchronous>, transform_indices = @transform_4, window_bounds = array<i64: 1, 96>}, {transform_indices = @transform_5, window_bounds = array<i64: 16, 96>}, {transform_indices = @transform_6, window_bounds = array<i64: 16, 96>}]} {
    %c0 = arith.constant 0 : index
    %c0_0 = arith.constant 0 : index
    %0 = vector.load %arg1[%c0, %c0_0] : memref<16x40xbf16, #tpu.memory_space<vmem>>, vector<16x40xbf16>
    %c0_1 = arith.constant 0 : index
    %c0_2 = arith.constant 0 : index
    %1 = vector.load %arg2[%c0_1, %c0_2] : memref<40x96xbf16, #tpu.memory_space<vmem>>, vector<40x96xbf16>
    %cst = arith.constant dense<0.000000e+00> : vector<16x96xf32>
    %2 = tpu.matmul %0, %1, %cst {dimension_numbers = #tpu.dot_dimension_numbers<[1], [0], [0], [1], [0, 0, 1, 1], [], []>} : vector<16x40xbf16>, vector<40x96xbf16>, vector<16x96xf32> -> vector<16x96xf32>
    %c0_3 = arith.constant 0 : index
    %c0_4 = arith.constant 0 : index
    %3 = vector.load %arg3[%c0_3, %c0_4] : memref<1x96xf32, #tpu.memory_space<vmem>>, vector<1x96xf32>
    %4 = vector.broadcast %3 : vector<1x96xf32> to vector<16x96xf32>
    %5 = arith.addf %2, %4 : vector<16x96xf32>
    %c0_5 = arith.constant 0 : index
    %c0_6 = arith.constant 0 : index
    %6 = vector.load %arg6[%c0_5, %c0_6] : memref<16x96xf32, #tpu.memory_space<vmem>>, vector<16x96xf32>
    tpu.vector_store %arg6[%c0_5, %c0_6], %5 {strides = array<i32>} : memref<16x96xf32, #tpu.memory_space<vmem>>, vector<16x96xf32>,
    %c0_7 = arith.constant 0 : index
    %c0_8 = arith.constant 0 : index
    %7 = vector.load %arg4[%c0_7, %c0_8] : memref<40x96xbf16, #tpu.memory_space<vmem>>, vector<40x96xbf16>
    %cst_9 = arith.constant dense<0.000000e+00> : vector<16x96xf32>
    %8 = tpu.matmul %0, %7, %cst_9 {dimension_numbers = #tpu.dot_dimension_numbers<[1], [0], [0], [1], [0, 0, 1, 1], [], []>} : vector<16x40xbf16>, vector<40x96xbf16>, vector<16x96xf32> -> vector<16x96xf32>
    %c0_10 = arith.constant 0 : index
    %c0_11 = arith.constant 0 : index
    %9 = vector.load %arg5[%c0_10, %c0_11] : memref<1x96xf32, #tpu.memory_space<vmem>>, vector<1x96xf32>
    %10 = vector.broadcast %9 : vector<1x96xf32> to vector<16x96xf32>
    %11 = arith.addf %8, %10 : vector<16x96xf32>
    %c0_12 = arith.constant 0 : index
    %c0_13 = arith.constant 0 : index
    %12 = vector.load %arg7[%c0_12, %c0_13] : memref<16x96xf32, #tpu.memory_space<vmem>>, vector<16x96xf32>
    tpu.vector_store %arg7[%c0_12, %c0_13], %11 {strides = array<i32>} : memref<16x96xf32, #tpu.memory_space<vmem>>, vector<16x96xf32>,
    return
  }
  func.func @transform_0(%arg0: i32) -> (i32, i32) {
    %c0_i32 = arith.constant 0 : i32
    %c0_i32_0 = arith.constant 0 : i32
    return %arg0, %c0_i32 : i32, i32
  }
  func.func @transform_1(%arg0: i32) -> (i32, i32) {
    %c0_i32 = arith.constant 0 : i32
    %c0_i32_0 = arith.constant 0 : i32
    %c0_i32_1 = arith.constant 0 : i32
    return %c0_i32, %c0_i32_0 : i32, i32
  }
  func.func @transform_2(%arg0: i32) -> (i32, i32) {
    %c0_i32 = arith.constant 0 : i32
    %c0_i32_0 = arith.constant 0 : i32
    %c0_i32_1 = arith.constant 0 : i32
    return %c0_i32, %c0_i32_0 : i32, i32
  }
  func.func @transform_3(%arg0: i32) -> (i32, i32) {
    %c0_i32 = arith.constant 0 : i32
    %c0_i32_0 = arith.constant 0 : i32
    %c0_i32_1 = arith.constant 0 : i32
    return %c0_i32, %c0_i32_0 : i32, i32
  }
  func.func @transform_4(%arg0: i32) -> (i32, i32) {
    %c0_i32 = arith.constant 0 : i32
    %c0_i32_0 = arith.constant 0 : i32
    %c0_i32_1 = arith.constant 0 : i32
    return %c0_i32, %c0_i32_0 : i32, i32
  }
  func.func @transform_5(%arg0: i32) -> (i32, i32) {
    %c0_i32 = arith.constant 0 : i32
    %c0_i32_0 = arith.constant 0 : i32
    return %arg0, %c0_i32 : i32, i32
  }
  func.func @transform_6(%arg0: i32) -> (i32, i32) {
    %c0_i32 = arith.constant 0 : i32
    %c0_i32_0 = arith.constant 0 : i32
    return %arg0, %c0_i32 : i32, i32
  }
}

module attributes {stable_mosaic.version = 11 : i64} {
  func.func @bigru_kernel(%arg0: i32, %arg1: memref<4x2x96xf32, #tpu.memory_space<vmem>>, %arg2: memref<4x2x96xf32, #tpu.memory_space<vmem>>, %arg3: memref<32x96xf32, #tpu.memory_space<vmem>>, %arg4: memref<1x96xf32, #tpu.memory_space<vmem>>, %arg5: memref<32x96xf32, #tpu.memory_space<vmem>>, %arg6: memref<1x96xf32, #tpu.memory_space<vmem>>, %arg7: memref<4x2x32xf32, #tpu.memory_space<vmem>>, %arg8: memref<4x2x32xf32, #tpu.memory_space<vmem>>, %arg9: memref<2x32xf32, #tpu.memory_space<vmem>>, %arg10: memref<2x32xf32, #tpu.memory_space<vmem>>) attributes {dimension_semantics = [#tpu.dimension_semantics<arbitrary>], iteration_bounds = array<i64: 2>, scalar_prefetch = 0 : i64, scratch_operands = 2 : i64, tpu.core_type = #tpu.core_type<tc>, window_params = [{transform_indices = @transform_0, window_bounds = array<i64: 4, 2, 96>}, {transform_indices = @transform_1, window_bounds = array<i64: 4, 2, 96>}, {pipeline_mode = #tpu.pipeline_mode<synchronous>, transform_indices = @transform_2, window_bounds = array<i64: 32, 96>}, {pipeline_mode = #tpu.pipeline_mode<synchronous>, transform_indices = @transform_3, window_bounds = array<i64: 1, 96>}, {pipeline_mode = #tpu.pipeline_mode<synchronous>, transform_indices = @transform_4, window_bounds = array<i64: 32, 96>}, {pipeline_mode = #tpu.pipeline_mode<synchronous>, transform_indices = @transform_5, window_bounds = array<i64: 1, 96>}, {transform_indices = @transform_6, window_bounds = array<i64: 4, 2, 32>}, {transform_indices = @transform_7, window_bounds = array<i64: 4, 2, 32>}]} {
    %c0_i32 = arith.constant 0 : i32
    %0 = arith.cmpi eq, %arg0, %c0_i32 : i32
    %1 = arith.extui %0 : i1 to i32
    %c0_i32_0 = arith.constant 0 : i32
    %2 = arith.cmpi ne, %1, %c0_i32_0 : i32
    scf.if %2 {
      %cst_92 = arith.constant 0.000000e+00 : f32
      %283 = vector.broadcast %cst_92 : f32 to vector<2x32xf32>
      %c0_93 = arith.constant 0 : index
      %c0_94 = arith.constant 0 : index
      %284 = vector.load %arg9[%c0_93, %c0_94] : memref<2x32xf32, #tpu.memory_space<vmem>>, vector<2x32xf32>
      tpu.vector_store %arg9[%c0_93, %c0_94], %283 {strides = array<i32>} : memref<2x32xf32, #tpu.memory_space<vmem>>, vector<2x32xf32>,
      %cst_95 = arith.constant 0.000000e+00 : f32
      %285 = vector.broadcast %cst_95 : f32 to vector<2x32xf32>
      %c0_96 = arith.constant 0 : index
      %c0_97 = arith.constant 0 : index
      %286 = vector.load %arg10[%c0_96, %c0_97] : memref<2x32xf32, #tpu.memory_space<vmem>>, vector<2x32xf32>
      tpu.vector_store %arg10[%c0_96, %c0_97], %285 {strides = array<i32>} : memref<2x32xf32, #tpu.memory_space<vmem>>, vector<2x32xf32>,
    } else {
    }
    %c0 = arith.constant 0 : index
    %c0_1 = arith.constant 0 : index
    %3 = vector.load %arg3[%c0, %c0_1] : memref<32x96xf32, #tpu.memory_space<vmem>>, vector<32x96xf32>
    %c0_2 = arith.constant 0 : index
    %c0_3 = arith.constant 0 : index
    %4 = vector.load %arg4[%c0_2, %c0_3] : memref<1x96xf32, #tpu.memory_space<vmem>>, vector<1x96xf32>
    %c0_4 = arith.constant 0 : index
    %c0_5 = arith.constant 0 : index
    %5 = vector.load %arg5[%c0_4, %c0_5] : memref<32x96xf32, #tpu.memory_space<vmem>>, vector<32x96xf32>
    %c0_6 = arith.constant 0 : index
    %c0_7 = arith.constant 0 : index
    %6 = vector.load %arg6[%c0_6, %c0_7] : memref<1x96xf32, #tpu.memory_space<vmem>>, vector<1x96xf32>
    %c0_8 = arith.constant 0 : index
    %c0_9 = arith.constant 0 : index
    %7 = vector.load %arg9[%c0_8, %c0_9] : memref<2x32xf32, #tpu.memory_space<vmem>>, vector<2x32xf32>
    %c0_10 = arith.constant 0 : index
    %c0_11 = arith.constant 0 : index
    %8 = vector.load %arg10[%c0_10, %c0_11] : memref<2x32xf32, #tpu.memory_space<vmem>>, vector<2x32xf32>
    %c0_12 = arith.constant 0 : index
    %c0_13 = arith.constant 0 : index
    %c0_14 = arith.constant 0 : index
    %9 = vector.load %arg1[%c0_12, %c0_13, %c0_14] : memref<4x2x96xf32, #tpu.memory_space<vmem>>, vector<1x2x96xf32>
    %10 = vector.shape_cast %9 : vector<1x2x96xf32> to vector<2x96xf32>
    %cst = arith.constant dense<0.000000e+00> : vector<2x96xf32>
    %11 = tpu.matmul %7, %3, %cst {dimension_numbers = #tpu.dot_dimension_numbers<[1], [0], [0], [1], [0, 0, 1, 1], [], []>} : vector<2x32xf32>, vector<32x96xf32>, vector<2x96xf32> -> vector<2x96xf32>
    %12 = vector.broadcast %4 : vector<1x96xf32> to vector<2x96xf32>
    %13 = arith.addf %11, %12 : vector<2x96xf32>
    %14 = vector.extract_strided_slice %10 {offsets = [0, 0], sizes = [2, 32], strides = [1, 1]} : vector<2x96xf32> to vector<2x32xf32>
    %15 = vector.extract_strided_slice %13 {offsets = [0, 0], sizes = [2, 32], strides = [1, 1]} : vector<2x96xf32> to vector<2x32xf32>
    %16 = arith.addf %14, %15 : vector<2x32xf32>
    %17 = arith.negf %16 : vector<2x32xf32>
    %18 = math.exp %17 : vector<2x32xf32>
    %cst_15 = arith.constant 1.000000e+00 : f32
    %19 = vector.broadcast %cst_15 : f32 to vector<2x32xf32>
    %20 = arith.addf %19, %18 : vector<2x32xf32>
    %21 = arith.divf %19, %20 : vector<2x32xf32>
    %22 = vector.extract_strided_slice %10 {offsets = [0, 32], sizes = [2, 32], strides = [1, 1]} : vector<2x96xf32> to vector<2x32xf32>
    %23 = vector.extract_strided_slice %13 {offsets = [0, 32], sizes = [2, 32], strides = [1, 1]} : vector<2x96xf32> to vector<2x32xf32>
    %24 = arith.addf %22, %23 : vector<2x32xf32>
    %25 = arith.negf %24 : vector<2x32xf32>
    %26 = math.exp %25 : vector<2x32xf32>
    %cst_16 = arith.constant 1.000000e+00 : f32
    %27 = vector.broadcast %cst_16 : f32 to vector<2x32xf32>
    %28 = arith.addf %27, %26 : vector<2x32xf32>
    %29 = arith.divf %27, %28 : vector<2x32xf32>
    %30 = vector.extract_strided_slice %10 {offsets = [0, 64], sizes = [2, 32], strides = [1, 1]} : vector<2x96xf32> to vector<2x32xf32>
    %31 = vector.extract_strided_slice %13 {offsets = [0, 64], sizes = [2, 32], strides = [1, 1]} : vector<2x96xf32> to vector<2x32xf32>
    %32 = arith.mulf %21, %31 : vector<2x32xf32>
    %33 = arith.addf %30, %32 : vector<2x32xf32>
    %34 = math.tanh %33 : vector<2x32xf32>
    %cst_17 = arith.constant 1.000000e+00 : f32
    %35 = vector.broadcast %cst_17 : f32 to vector<2x32xf32>
    %36 = arith.subf %35, %29 : vector<2x32xf32>
    %37 = arith.mulf %36, %34 : vector<2x32xf32>
    %38 = arith.mulf %29, %7 : vector<2x32xf32>
    %39 = arith.addf %37, %38 : vector<2x32xf32>
    %c0_18 = arith.constant 0 : index
    %c0_19 = arith.constant 0 : index
    %c0_20 = arith.constant 0 : index
    %40 = vector.load %arg7[%c0_18, %c0_19, %c0_20] : memref<4x2x32xf32, #tpu.memory_space<vmem>>, vector<1x2x32xf32>
    %41 = vector.shape_cast %40 : vector<1x2x32xf32> to vector<2x32xf32>
    %42 = vector.shape_cast %39 : vector<2x32xf32> to vector<1x2x32xf32>
    tpu.vector_store %arg7[%c0_18, %c0_19, %c0_20], %42 {strides = array<i32>} : memref<4x2x32xf32, #tpu.memory_space<vmem>>, vector<1x2x32xf32>,
    %c3 = arith.constant 3 : index
    %c0_21 = arith.constant 0 : index
    %c0_22 = arith.constant 0 : index
    %43 = vector.load %arg2[%c3, %c0_21, %c0_22] : memref<4x2x96xf32, #tpu.memory_space<vmem>>, vector<1x2x96xf32>
    %44 = vector.shape_cast %43 : vector<1x2x96xf32> to vector<2x96xf32>
    %cst_23 = arith.constant dense<0.000000e+00> : vector<2x96xf32>
    %45 = tpu.matmul %8, %5, %cst_23 {dimension_numbers = #tpu.dot_dimension_numbers<[1], [0], [0], [1], [0, 0, 1, 1], [], []>} : vector<2x32xf32>, vector<32x96xf32>, vector<2x96xf32> -> vector<2x96xf32>
    %46 = vector.broadcast %6 : vector<1x96xf32> to vector<2x96xf32>
    %47 = arith.addf %45, %46 : vector<2x96xf32>
    %48 = vector.extract_strided_slice %44 {offsets = [0, 0], sizes = [2, 32], strides = [1, 1]} : vector<2x96xf32> to vector<2x32xf32>
    %49 = vector.extract_strided_slice %47 {offsets = [0, 0], sizes = [2, 32], strides = [1, 1]} : vector<2x96xf32> to vector<2x32xf32>
    %50 = arith.addf %48, %49 : vector<2x32xf32>
    %51 = arith.negf %50 : vector<2x32xf32>
    %52 = math.exp %51 : vector<2x32xf32>
    %cst_24 = arith.constant 1.000000e+00 : f32
    %53 = vector.broadcast %cst_24 : f32 to vector<2x32xf32>
    %54 = arith.addf %53, %52 : vector<2x32xf32>
    %55 = arith.divf %53, %54 : vector<2x32xf32>
    %56 = vector.extract_strided_slice %44 {offsets = [0, 32], sizes = [2, 32], strides = [1, 1]} : vector<2x96xf32> to vector<2x32xf32>
    %57 = vector.extract_strided_slice %47 {offsets = [0, 32], sizes = [2, 32], strides = [1, 1]} : vector<2x96xf32> to vector<2x32xf32>
    %58 = arith.addf %56, %57 : vector<2x32xf32>
    %59 = arith.negf %58 : vector<2x32xf32>
    %60 = math.exp %59 : vector<2x32xf32>
    %cst_25 = arith.constant 1.000000e+00 : f32
    %61 = vector.broadcast %cst_25 : f32 to vector<2x32xf32>
    %62 = arith.addf %61, %60 : vector<2x32xf32>
    %63 = arith.divf %61, %62 : vector<2x32xf32>
    %64 = vector.extract_strided_slice %44 {offsets = [0, 64], sizes = [2, 32], strides = [1, 1]} : vector<2x96xf32> to vector<2x32xf32>
    %65 = vector.extract_strided_slice %47 {offsets = [0, 64], sizes = [2, 32], strides = [1, 1]} : vector<2x96xf32> to vector<2x32xf32>
    %66 = arith.mulf %55, %65 : vector<2x32xf32>
    %67 = arith.addf %64, %66 : vector<2x32xf32>
    %68 = math.tanh %67 : vector<2x32xf32>
    %cst_26 = arith.constant 1.000000e+00 : f32
    %69 = vector.broadcast %cst_26 : f32 to vector<2x32xf32>
    %70 = arith.subf %69, %63 : vector<2x32xf32>
    %71 = arith.mulf %70, %68 : vector<2x32xf32>
    %72 = arith.mulf %63, %8 : vector<2x32xf32>
    %73 = arith.addf %71, %72 : vector<2x32xf32>
    %c3_27 = arith.constant 3 : index
    %c0_28 = arith.constant 0 : index
    %c0_29 = arith.constant 0 : index
    %74 = vector.load %arg8[%c3_27, %c0_28, %c0_29] : memref<4x2x32xf32, #tpu.memory_space<vmem>>, vector<1x2x32xf32>
    %75 = vector.shape_cast %74 : vector<1x2x32xf32> to vector<2x32xf32>
    %76 = vector.shape_cast %73 : vector<2x32xf32> to vector<1x2x32xf32>
    tpu.vector_store %arg8[%c3_27, %c0_28, %c0_29], %76 {strides = array<i32>} : memref<4x2x32xf32, #tpu.memory_space<vmem>>, vector<1x2x32xf32>,
    %c1 = arith.constant 1 : index
    %c0_30 = arith.constant 0 : index
    %c0_31 = arith.constant 0 : index
    %77 = vector.load %arg1[%c1, %c0_30, %c0_31] : memref<4x2x96xf32, #tpu.memory_space<vmem>>, vector<1x2x96xf32>
    %78 = vector.shape_cast %77 : vector<1x2x96xf32> to vector<2x96xf32>
    %cst_32 = arith.constant dense<0.000000e+00> : vector<2x96xf32>
    %79 = tpu.matmul %39, %3, %cst_32 {dimension_numbers = #tpu.dot_dimension_numbers<[1], [0], [0], [1], [0, 0, 1, 1], [], []>} : vector<2x32xf32>, vector<32x96xf32>, vector<2x96xf32> -> vector<2x96xf32>
    %80 = vector.broadcast %4 : vector<1x96xf32> to vector<2x96xf32>
    %81 = arith.addf %79, %80 : vector<2x96xf32>
    %82 = vector.extract_strided_slice %78 {offsets = [0, 0], sizes = [2, 32], strides = [1, 1]} : vector<2x96xf32> to vector<2x32xf32>
    %83 = vector.extract_strided_slice %81 {offsets = [0, 0], sizes = [2, 32], strides = [1, 1]} : vector<2x96xf32> to vector<2x32xf32>
    %84 = arith.addf %82, %83 : vector<2x32xf32>
    %85 = arith.negf %84 : vector<2x32xf32>
    %86 = math.exp %85 : vector<2x32xf32>
    %cst_33 = arith.constant 1.000000e+00 : f32
    %87 = vector.broadcast %cst_33 : f32 to vector<2x32xf32>
    %88 = arith.addf %87, %86 : vector<2x32xf32>
    %89 = arith.divf %87, %88 : vector<2x32xf32>
    %90 = vector.extract_strided_slice %78 {offsets = [0, 32], sizes = [2, 32], strides = [1, 1]} : vector<2x96xf32> to vector<2x32xf32>
    %91 = vector.extract_strided_slice %81 {offsets = [0, 32], sizes = [2, 32], strides = [1, 1]} : vector<2x96xf32> to vector<2x32xf32>
    %92 = arith.addf %90, %91 : vector<2x32xf32>
    %93 = arith.negf %92 : vector<2x32xf32>
    %94 = math.exp %93 : vector<2x32xf32>
    %cst_34 = arith.constant 1.000000e+00 : f32
    %95 = vector.broadcast %cst_34 : f32 to vector<2x32xf32>
    %96 = arith.addf %95, %94 : vector<2x32xf32>
    %97 = arith.divf %95, %96 : vector<2x32xf32>
    %98 = vector.extract_strided_slice %78 {offsets = [0, 64], sizes = [2, 32], strides = [1, 1]} : vector<2x96xf32> to vector<2x32xf32>
    %99 = vector.extract_strided_slice %81 {offsets = [0, 64], sizes = [2, 32], strides = [1, 1]} : vector<2x96xf32> to vector<2x32xf32>
    %100 = arith.mulf %89, %99 : vector<2x32xf32>
    %101 = arith.addf %98, %100 : vector<2x32xf32>
    %102 = math.tanh %101 : vector<2x32xf32>
    %cst_35 = arith.constant 1.000000e+00 : f32
    %103 = vector.broadcast %cst_35 : f32 to vector<2x32xf32>
    %104 = arith.subf %103, %97 : vector<2x32xf32>
    %105 = arith.mulf %104, %102 : vector<2x32xf32>
    %106 = arith.mulf %97, %39 : vector<2x32xf32>
    %107 = arith.addf %105, %106 : vector<2x32xf32>
    %c1_36 = arith.constant 1 : index
    %c0_37 = arith.constant 0 : index
    %c0_38 = arith.constant 0 : index
    %108 = vector.load %arg7[%c1_36, %c0_37, %c0_38] : memref<4x2x32xf32, #tpu.memory_space<vmem>>, vector<1x2x32xf32>
    %109 = vector.shape_cast %108 : vector<1x2x32xf32> to vector<2x32xf32>
    %110 = vector.shape_cast %107 : vector<2x32xf32> to vector<1x2x32xf32>
    tpu.vector_store %arg7[%c1_36, %c0_37, %c0_38], %110 {strides = array<i32>} : memref<4x2x32xf32, #tpu.memory_space<vmem>>, vector<1x2x32xf32>,
    %c2 = arith.constant 2 : index
    %c0_39 = arith.constant 0 : index
    %c0_40 = arith.constant 0 : index
    %111 = vector.load %arg2[%c2, %c0_39, %c0_40] : memref<4x2x96xf32, #tpu.memory_space<vmem>>, vector<1x2x96xf32>
    %112 = vector.shape_cast %111 : vector<1x2x96xf32> to vector<2x96xf32>
    %cst_41 = arith.constant dense<0.000000e+00> : vector<2x96xf32>
    %113 = tpu.matmul %73, %5, %cst_41 {dimension_numbers = #tpu.dot_dimension_numbers<[1], [0], [0], [1], [0, 0, 1, 1], [], []>} : vector<2x32xf32>, vector<32x96xf32>, vector<2x96xf32> -> vector<2x96xf32>
    %114 = vector.broadcast %6 : vector<1x96xf32> to vector<2x96xf32>
    %115 = arith.addf %113, %114 : vector<2x96xf32>
    %116 = vector.extract_strided_slice %112 {offsets = [0, 0], sizes = [2, 32], strides = [1, 1]} : vector<2x96xf32> to vector<2x32xf32>
    %117 = vector.extract_strided_slice %115 {offsets = [0, 0], sizes = [2, 32], strides = [1, 1]} : vector<2x96xf32> to vector<2x32xf32>
    %118 = arith.addf %116, %117 : vector<2x32xf32>
    %119 = arith.negf %118 : vector<2x32xf32>
    %120 = math.exp %119 : vector<2x32xf32>
    %cst_42 = arith.constant 1.000000e+00 : f32
    %121 = vector.broadcast %cst_42 : f32 to vector<2x32xf32>
    %122 = arith.addf %121, %120 : vector<2x32xf32>
    %123 = arith.divf %121, %122 : vector<2x32xf32>
    %124 = vector.extract_strided_slice %112 {offsets = [0, 32], sizes = [2, 32], strides = [1, 1]} : vector<2x96xf32> to vector<2x32xf32>
    %125 = vector.extract_strided_slice %115 {offsets = [0, 32], sizes = [2, 32], strides = [1, 1]} : vector<2x96xf32> to vector<2x32xf32>
    %126 = arith.addf %124, %125 : vector<2x32xf32>
    %127 = arith.negf %126 : vector<2x32xf32>
    %128 = math.exp %127 : vector<2x32xf32>
    %cst_43 = arith.constant 1.000000e+00 : f32
    %129 = vector.broadcast %cst_43 : f32 to vector<2x32xf32>
    %130 = arith.addf %129, %128 : vector<2x32xf32>
    %131 = arith.divf %129, %130 : vector<2x32xf32>
    %132 = vector.extract_strided_slice %112 {offsets = [0, 64], sizes = [2, 32], strides = [1, 1]} : vector<2x96xf32> to vector<2x32xf32>
    %133 = vector.extract_strided_slice %115 {offsets = [0, 64], sizes = [2, 32], strides = [1, 1]} : vector<2x96xf32> to vector<2x32xf32>
    %134 = arith.mulf %123, %133 : vector<2x32xf32>
    %135 = arith.addf %132, %134 : vector<2x32xf32>
    %136 = math.tanh %135 : vector<2x32xf32>
    %cst_44 = arith.constant 1.000000e+00 : f32
    %137 = vector.broadcast %cst_44 : f32 to vector<2x32xf32>
    %138 = arith.subf %137, %131 : vector<2x32xf32>
    %139 = arith.mulf %138, %136 : vector<2x32xf32>
    %140 = arith.mulf %131, %73 : vector<2x32xf32>
    %141 = arith.addf %139, %140 : vector<2x32xf32>
    %c2_45 = arith.constant 2 : index
    %c0_46 = arith.constant 0 : index
    %c0_47 = arith.constant 0 : index
    %142 = vector.load %arg8[%c2_45, %c0_46, %c0_47] : memref<4x2x32xf32, #tpu.memory_space<vmem>>, vector<1x2x32xf32>
    %143 = vector.shape_cast %142 : vector<1x2x32xf32> to vector<2x32xf32>
    %144 = vector.shape_cast %141 : vector<2x32xf32> to vector<1x2x32xf32>
    tpu.vector_store %arg8[%c2_45, %c0_46, %c0_47], %144 {strides = array<i32>} : memref<4x2x32xf32, #tpu.memory_space<vmem>>, vector<1x2x32xf32>,
    %c2_48 = arith.constant 2 : index
    %c0_49 = arith.constant 0 : index
    %c0_50 = arith.constant 0 : index
    %145 = vector.load %arg1[%c2_48, %c0_49, %c0_50] : memref<4x2x96xf32, #tpu.memory_space<vmem>>, vector<1x2x96xf32>
    %146 = vector.shape_cast %145 : vector<1x2x96xf32> to vector<2x96xf32>
    %cst_51 = arith.constant dense<0.000000e+00> : vector<2x96xf32>
    %147 = tpu.matmul %107, %3, %cst_51 {dimension_numbers = #tpu.dot_dimension_numbers<[1], [0], [0], [1], [0, 0, 1, 1], [], []>} : vector<2x32xf32>, vector<32x96xf32>, vector<2x96xf32> -> vector<2x96xf32>
    %148 = vector.broadcast %4 : vector<1x96xf32> to vector<2x96xf32>
    %149 = arith.addf %147, %148 : vector<2x96xf32>
    %150 = vector.extract_strided_slice %146 {offsets = [0, 0], sizes = [2, 32], strides = [1, 1]} : vector<2x96xf32> to vector<2x32xf32>
    %151 = vector.extract_strided_slice %149 {offsets = [0, 0], sizes = [2, 32], strides = [1, 1]} : vector<2x96xf32> to vector<2x32xf32>
    %152 = arith.addf %150, %151 : vector<2x32xf32>
    %153 = arith.negf %152 : vector<2x32xf32>
    %154 = math.exp %153 : vector<2x32xf32>
    %cst_52 = arith.constant 1.000000e+00 : f32
    %155 = vector.broadcast %cst_52 : f32 to vector<2x32xf32>
    %156 = arith.addf %155, %154 : vector<2x32xf32>
    %157 = arith.divf %155, %156 : vector<2x32xf32>
    %158 = vector.extract_strided_slice %146 {offsets = [0, 32], sizes = [2, 32], strides = [1, 1]} : vector<2x96xf32> to vector<2x32xf32>
    %159 = vector.extract_strided_slice %149 {offsets = [0, 32], sizes = [2, 32], strides = [1, 1]} : vector<2x96xf32> to vector<2x32xf32>
    %160 = arith.addf %158, %159 : vector<2x32xf32>
    %161 = arith.negf %160 : vector<2x32xf32>
    %162 = math.exp %161 : vector<2x32xf32>
    %cst_53 = arith.constant 1.000000e+00 : f32
    %163 = vector.broadcast %cst_53 : f32 to vector<2x32xf32>
    %164 = arith.addf %163, %162 : vector<2x32xf32>
    %165 = arith.divf %163, %164 : vector<2x32xf32>
    %166 = vector.extract_strided_slice %146 {offsets = [0, 64], sizes = [2, 32], strides = [1, 1]} : vector<2x96xf32> to vector<2x32xf32>
    %167 = vector.extract_strided_slice %149 {offsets = [0, 64], sizes = [2, 32], strides = [1, 1]} : vector<2x96xf32> to vector<2x32xf32>
    %168 = arith.mulf %157, %167 : vector<2x32xf32>
    %169 = arith.addf %166, %168 : vector<2x32xf32>
    %170 = math.tanh %169 : vector<2x32xf32>
    %cst_54 = arith.constant 1.000000e+00 : f32
    %171 = vector.broadcast %cst_54 : f32 to vector<2x32xf32>
    %172 = arith.subf %171, %165 : vector<2x32xf32>
    %173 = arith.mulf %172, %170 : vector<2x32xf32>
    %174 = arith.mulf %165, %107 : vector<2x32xf32>
    %175 = arith.addf %173, %174 : vector<2x32xf32>
    %c2_55 = arith.constant 2 : index
    %c0_56 = arith.constant 0 : index
    %c0_57 = arith.constant 0 : index
    %176 = vector.load %arg7[%c2_55, %c0_56, %c0_57] : memref<4x2x32xf32, #tpu.memory_space<vmem>>, vector<1x2x32xf32>
    %177 = vector.shape_cast %176 : vector<1x2x32xf32> to vector<2x32xf32>
    %178 = vector.shape_cast %175 : vector<2x32xf32> to vector<1x2x32xf32>
    tpu.vector_store %arg7[%c2_55, %c0_56, %c0_57], %178 {strides = array<i32>} : memref<4x2x32xf32, #tpu.memory_space<vmem>>, vector<1x2x32xf32>,
    %c1_58 = arith.constant 1 : index
    %c0_59 = arith.constant 0 : index
    %c0_60 = arith.constant 0 : index
    %179 = vector.load %arg2[%c1_58, %c0_59, %c0_60] : memref<4x2x96xf32, #tpu.memory_space<vmem>>, vector<1x2x96xf32>
    %180 = vector.shape_cast %179 : vector<1x2x96xf32> to vector<2x96xf32>
    %cst_61 = arith.constant dense<0.000000e+00> : vector<2x96xf32>
    %181 = tpu.matmul %141, %5, %cst_61 {dimension_numbers = #tpu.dot_dimension_numbers<[1], [0], [0], [1], [0, 0, 1, 1], [], []>} : vector<2x32xf32>, vector<32x96xf32>, vector<2x96xf32> -> vector<2x96xf32>
    %182 = vector.broadcast %6 : vector<1x96xf32> to vector<2x96xf32>
    %183 = arith.addf %181, %182 : vector<2x96xf32>
    %184 = vector.extract_strided_slice %180 {offsets = [0, 0], sizes = [2, 32], strides = [1, 1]} : vector<2x96xf32> to vector<2x32xf32>
    %185 = vector.extract_strided_slice %183 {offsets = [0, 0], sizes = [2, 32], strides = [1, 1]} : vector<2x96xf32> to vector<2x32xf32>
    %186 = arith.addf %184, %185 : vector<2x32xf32>
    %187 = arith.negf %186 : vector<2x32xf32>
    %188 = math.exp %187 : vector<2x32xf32>
    %cst_62 = arith.constant 1.000000e+00 : f32
    %189 = vector.broadcast %cst_62 : f32 to vector<2x32xf32>
    %190 = arith.addf %189, %188 : vector<2x32xf32>
    %191 = arith.divf %189, %190 : vector<2x32xf32>
    %192 = vector.extract_strided_slice %180 {offsets = [0, 32], sizes = [2, 32], strides = [1, 1]} : vector<2x96xf32> to vector<2x32xf32>
    %193 = vector.extract_strided_slice %183 {offsets = [0, 32], sizes = [2, 32], strides = [1, 1]} : vector<2x96xf32> to vector<2x32xf32>
    %194 = arith.addf %192, %193 : vector<2x32xf32>
    %195 = arith.negf %194 : vector<2x32xf32>
    %196 = math.exp %195 : vector<2x32xf32>
    %cst_63 = arith.constant 1.000000e+00 : f32
    %197 = vector.broadcast %cst_63 : f32 to vector<2x32xf32>
    %198 = arith.addf %197, %196 : vector<2x32xf32>
    %199 = arith.divf %197, %198 : vector<2x32xf32>
    %200 = vector.extract_strided_slice %180 {offsets = [0, 64], sizes = [2, 32], strides = [1, 1]} : vector<2x96xf32> to vector<2x32xf32>
    %201 = vector.extract_strided_slice %183 {offsets = [0, 64], sizes = [2, 32], strides = [1, 1]} : vector<2x96xf32> to vector<2x32xf32>
    %202 = arith.mulf %191, %201 : vector<2x32xf32>
    %203 = arith.addf %200, %202 : vector<2x32xf32>
    %204 = math.tanh %203 : vector<2x32xf32>
    %cst_64 = arith.constant 1.000000e+00 : f32
    %205 = vector.broadcast %cst_64 : f32 to vector<2x32xf32>
    %206 = arith.subf %205, %199 : vector<2x32xf32>
    %207 = arith.mulf %206, %204 : vector<2x32xf32>
    %208 = arith.mulf %199, %141 : vector<2x32xf32>
    %209 = arith.addf %207, %208 : vector<2x32xf32>
    %c1_65 = arith.constant 1 : index
    %c0_66 = arith.constant 0 : index
    %c0_67 = arith.constant 0 : index
    %210 = vector.load %arg8[%c1_65, %c0_66, %c0_67] : memref<4x2x32xf32, #tpu.memory_space<vmem>>, vector<1x2x32xf32>
    %211 = vector.shape_cast %210 : vector<1x2x32xf32> to vector<2x32xf32>
    %212 = vector.shape_cast %209 : vector<2x32xf32> to vector<1x2x32xf32>
    tpu.vector_store %arg8[%c1_65, %c0_66, %c0_67], %212 {strides = array<i32>} : memref<4x2x32xf32, #tpu.memory_space<vmem>>, vector<1x2x32xf32>,
    %c3_68 = arith.constant 3 : index
    %c0_69 = arith.constant 0 : index
    %c0_70 = arith.constant 0 : index
    %213 = vector.load %arg1[%c3_68, %c0_69, %c0_70] : memref<4x2x96xf32, #tpu.memory_space<vmem>>, vector<1x2x96xf32>
    %214 = vector.shape_cast %213 : vector<1x2x96xf32> to vector<2x96xf32>
    %cst_71 = arith.constant dense<0.000000e+00> : vector<2x96xf32>
    %215 = tpu.matmul %175, %3, %cst_71 {dimension_numbers = #tpu.dot_dimension_numbers<[1], [0], [0], [1], [0, 0, 1, 1], [], []>} : vector<2x32xf32>, vector<32x96xf32>, vector<2x96xf32> -> vector<2x96xf32>
    %216 = vector.broadcast %4 : vector<1x96xf32> to vector<2x96xf32>
    %217 = arith.addf %215, %216 : vector<2x96xf32>
    %218 = vector.extract_strided_slice %214 {offsets = [0, 0], sizes = [2, 32], strides = [1, 1]} : vector<2x96xf32> to vector<2x32xf32>
    %219 = vector.extract_strided_slice %217 {offsets = [0, 0], sizes = [2, 32], strides = [1, 1]} : vector<2x96xf32> to vector<2x32xf32>
    %220 = arith.addf %218, %219 : vector<2x32xf32>
    %221 = arith.negf %220 : vector<2x32xf32>
    %222 = math.exp %221 : vector<2x32xf32>
    %cst_72 = arith.constant 1.000000e+00 : f32
    %223 = vector.broadcast %cst_72 : f32 to vector<2x32xf32>
    %224 = arith.addf %223, %222 : vector<2x32xf32>
    %225 = arith.divf %223, %224 : vector<2x32xf32>
    %226 = vector.extract_strided_slice %214 {offsets = [0, 32], sizes = [2, 32], strides = [1, 1]} : vector<2x96xf32> to vector<2x32xf32>
    %227 = vector.extract_strided_slice %217 {offsets = [0, 32], sizes = [2, 32], strides = [1, 1]} : vector<2x96xf32> to vector<2x32xf32>
    %228 = arith.addf %226, %227 : vector<2x32xf32>
    %229 = arith.negf %228 : vector<2x32xf32>
    %230 = math.exp %229 : vector<2x32xf32>
    %cst_73 = arith.constant 1.000000e+00 : f32
    %231 = vector.broadcast %cst_73 : f32 to vector<2x32xf32>
    %232 = arith.addf %231, %230 : vector<2x32xf32>
    %233 = arith.divf %231, %232 : vector<2x32xf32>
    %234 = vector.extract_strided_slice %214 {offsets = [0, 64], sizes = [2, 32], strides = [1, 1]} : vector<2x96xf32> to vector<2x32xf32>
    %235 = vector.extract_strided_slice %217 {offsets = [0, 64], sizes = [2, 32], strides = [1, 1]} : vector<2x96xf32> to vector<2x32xf32>
    %236 = arith.mulf %225, %235 : vector<2x32xf32>
    %237 = arith.addf %234, %236 : vector<2x32xf32>
    %238 = math.tanh %237 : vector<2x32xf32>
    %cst_74 = arith.constant 1.000000e+00 : f32
    %239 = vector.broadcast %cst_74 : f32 to vector<2x32xf32>
    %240 = arith.subf %239, %233 : vector<2x32xf32>
    %241 = arith.mulf %240, %238 : vector<2x32xf32>
    %242 = arith.mulf %233, %175 : vector<2x32xf32>
    %243 = arith.addf %241, %242 : vector<2x32xf32>
    %c3_75 = arith.constant 3 : index
    %c0_76 = arith.constant 0 : index
    %c0_77 = arith.constant 0 : index
    %244 = vector.load %arg7[%c3_75, %c0_76, %c0_77] : memref<4x2x32xf32, #tpu.memory_space<vmem>>, vector<1x2x32xf32>
    %245 = vector.shape_cast %244 : vector<1x2x32xf32> to vector<2x32xf32>
    %246 = vector.shape_cast %243 : vector<2x32xf32> to vector<1x2x32xf32>
    tpu.vector_store %arg7[%c3_75, %c0_76, %c0_77], %246 {strides = array<i32>} : memref<4x2x32xf32, #tpu.memory_space<vmem>>, vector<1x2x32xf32>,
    %c0_78 = arith.constant 0 : index
    %c0_79 = arith.constant 0 : index
    %c0_80 = arith.constant 0 : index
    %247 = vector.load %arg2[%c0_78, %c0_79, %c0_80] : memref<4x2x96xf32, #tpu.memory_space<vmem>>, vector<1x2x96xf32>
    %248 = vector.shape_cast %247 : vector<1x2x96xf32> to vector<2x96xf32>
    %cst_81 = arith.constant dense<0.000000e+00> : vector<2x96xf32>
    %249 = tpu.matmul %209, %5, %cst_81 {dimension_numbers = #tpu.dot_dimension_numbers<[1], [0], [0], [1], [0, 0, 1, 1], [], []>} : vector<2x32xf32>, vector<32x96xf32>, vector<2x96xf32> -> vector<2x96xf32>
    %250 = vector.broadcast %6 : vector<1x96xf32> to vector<2x96xf32>
    %251 = arith.addf %249, %250 : vector<2x96xf32>
    %252 = vector.extract_strided_slice %248 {offsets = [0, 0], sizes = [2, 32], strides = [1, 1]} : vector<2x96xf32> to vector<2x32xf32>
    %253 = vector.extract_strided_slice %251 {offsets = [0, 0], sizes = [2, 32], strides = [1, 1]} : vector<2x96xf32> to vector<2x32xf32>
    %254 = arith.addf %252, %253 : vector<2x32xf32>
    %255 = arith.negf %254 : vector<2x32xf32>
    %256 = math.exp %255 : vector<2x32xf32>
    %cst_82 = arith.constant 1.000000e+00 : f32
    %257 = vector.broadcast %cst_82 : f32 to vector<2x32xf32>
    %258 = arith.addf %257, %256 : vector<2x32xf32>
    %259 = arith.divf %257, %258 : vector<2x32xf32>
    %260 = vector.extract_strided_slice %248 {offsets = [0, 32], sizes = [2, 32], strides = [1, 1]} : vector<2x96xf32> to vector<2x32xf32>
    %261 = vector.extract_strided_slice %251 {offsets = [0, 32], sizes = [2, 32], strides = [1, 1]} : vector<2x96xf32> to vector<2x32xf32>
    %262 = arith.addf %260, %261 : vector<2x32xf32>
    %263 = arith.negf %262 : vector<2x32xf32>
    %264 = math.exp %263 : vector<2x32xf32>
    %cst_83 = arith.constant 1.000000e+00 : f32
    %265 = vector.broadcast %cst_83 : f32 to vector<2x32xf32>
    %266 = arith.addf %265, %264 : vector<2x32xf32>
    %267 = arith.divf %265, %266 : vector<2x32xf32>
    %268 = vector.extract_strided_slice %248 {offsets = [0, 64], sizes = [2, 32], strides = [1, 1]} : vector<2x96xf32> to vector<2x32xf32>
    %269 = vector.extract_strided_slice %251 {offsets = [0, 64], sizes = [2, 32], strides = [1, 1]} : vector<2x96xf32> to vector<2x32xf32>
    %270 = arith.mulf %259, %269 : vector<2x32xf32>
    %271 = arith.addf %268, %270 : vector<2x32xf32>
    %272 = math.tanh %271 : vector<2x32xf32>
    %cst_84 = arith.constant 1.000000e+00 : f32
    %273 = vector.broadcast %cst_84 : f32 to vector<2x32xf32>
    %274 = arith.subf %273, %267 : vector<2x32xf32>
    %275 = arith.mulf %274, %272 : vector<2x32xf32>
    %276 = arith.mulf %267, %209 : vector<2x32xf32>
    %277 = arith.addf %275, %276 : vector<2x32xf32>
    %c0_85 = arith.constant 0 : index
    %c0_86 = arith.constant 0 : index
    %c0_87 = arith.constant 0 : index
    %278 = vector.load %arg8[%c0_85, %c0_86, %c0_87] : memref<4x2x32xf32, #tpu.memory_space<vmem>>, vector<1x2x32xf32>
    %279 = vector.shape_cast %278 : vector<1x2x32xf32> to vector<2x32xf32>
    %280 = vector.shape_cast %277 : vector<2x32xf32> to vector<1x2x32xf32>
    tpu.vector_store %arg8[%c0_85, %c0_86, %c0_87], %280 {strides = array<i32>} : memref<4x2x32xf32, #tpu.memory_space<vmem>>, vector<1x2x32xf32>,
    %c0_88 = arith.constant 0 : index
    %c0_89 = arith.constant 0 : index
    %281 = vector.load %arg9[%c0_88, %c0_89] : memref<2x32xf32, #tpu.memory_space<vmem>>, vector<2x32xf32>
    tpu.vector_store %arg9[%c0_88, %c0_89], %243 {strides = array<i32>} : memref<2x32xf32, #tpu.memory_space<vmem>>, vector<2x32xf32>,
    %c0_90 = arith.constant 0 : index
    %c0_91 = arith.constant 0 : index
    %282 = vector.load %arg10[%c0_90, %c0_91] : memref<2x32xf32, #tpu.memory_space<vmem>>, vector<2x32xf32>
    tpu.vector_store %arg10[%c0_90, %c0_91], %277 {strides = array<i32>} : memref<2x32xf32, #tpu.memory_space<vmem>>, vector<2x32xf32>,
    return
  }
  func.func @transform_0(%arg0: i32) -> (i32, i32, i32) {
    %c0_i32 = arith.constant 0 : i32
    %c0_i32_0 = arith.constant 0 : i32
    %c0_i32_1 = arith.constant 0 : i32
    return %arg0, %c0_i32, %c0_i32_0 : i32, i32, i32
  }
  func.func @transform_1(%arg0: i32) -> (i32, i32, i32) {
    %c1_i32 = arith.constant 1 : i32
    %0 = arith.subi %c1_i32, %arg0 : i32
    %c0_i32 = arith.constant 0 : i32
    %c0_i32_0 = arith.constant 0 : i32
    %c0_i32_1 = arith.constant 0 : i32
    return %0, %c0_i32, %c0_i32_0 : i32, i32, i32
  }
  func.func @transform_2(%arg0: i32) -> (i32, i32) {
    %c0_i32 = arith.constant 0 : i32
    %c0_i32_0 = arith.constant 0 : i32
    %c0_i32_1 = arith.constant 0 : i32
    return %c0_i32, %c0_i32_0 : i32, i32
  }
  func.func @transform_3(%arg0: i32) -> (i32, i32) {
    %c0_i32 = arith.constant 0 : i32
    %c0_i32_0 = arith.constant 0 : i32
    %c0_i32_1 = arith.constant 0 : i32
    return %c0_i32, %c0_i32_0 : i32, i32
  }
  func.func @transform_4(%arg0: i32) -> (i32, i32) {
    %c0_i32 = arith.constant 0 : i32
    %c0_i32_0 = arith.constant 0 : i32
    %c0_i32_1 = arith.constant 0 : i32
    return %c0_i32, %c0_i32_0 : i32, i32
  }
  func.func @transform_5(%arg0: i32) -> (i32, i32) {
    %c0_i32 = arith.constant 0 : i32
    %c0_i32_0 = arith.constant 0 : i32
    %c0_i32_1 = arith.constant 0 : i32
    return %c0_i32, %c0_i32_0 : i32, i32
  }
  func.func @transform_6(%arg0: i32) -> (i32, i32, i32) {
    %c0_i32 = arith.constant 0 : i32
    %c0_i32_0 = arith.constant 0 : i32
    %c0_i32_1 = arith.constant 0 : i32
    return %arg0, %c0_i32, %c0_i32_0 : i32, i32, i32
  }
  func.func @transform_7(%arg0: i32) -> (i32, i32, i32) {
    %c1_i32 = arith.constant 1 : i32
    %0 = arith.subi %c1_i32, %arg0 : i32
    %c0_i32 = arith.constant 0 : i32
    %c0_i32_0 = arith.constant 0 : i32
    %c0_i32_1 = arith.constant 0 : i32
    return %0, %c0_i32, %c0_i32_0 : i32, i32, i32
  }
}

</mosaic_0001>

<bundles_post_ra>
// kernel: input_embedding_forward.4
= control target key start
LH: loop header
LB: loop body
LE: loop exit
PB: predicated region body
PF: predicated region fallthrough
CT: control target
= control target key end

     0   :  { %vm58_vm0 = vcmask 1043456   ;;  %vm54_vm1 = vcmask 326656   ;;  %vm76_vm2 = vcmask 785408   ;;  %s233_s1 = inlined_call_operand.vmem [shape: bf16[40,96], index: 1, kind: input, shape index: {}]   ;;  %s234_s3 = inlined_call_operand.vmem [shape: bf16[40,96], index: 3, kind: input, shape index: {}]   ;;  %s235_s2 = inlined_call_operand.vmem [shape: f32[1,96], index: 2, kind: input, shape index: {}]   ;;  %s236_s0 = inlined_call_operand.vmem [shape: bf16[16,40], index: 0, kind: input, shape index: {}]   ;;  %s237_s4 = inlined_call_operand.vmem [shape: f32[1,96], index: 4, kind: input, shape index: {}]   ;;  %s238_s5 = inlined_call_operand.vmem [shape: f32[16,96], index: 5, kind: output, shape index: {0}]   ;;  %s239_s6 = inlined_call_operand.vmem [shape: f32[16,96], index: 6, kind: output, shape index: {1}]  }
   0x1   :  { %v29_v0 = vld [vmem:[%s233_s1 + $0x10] sm:$0xf]  ;;  %v154_v8 = vld [vmem:[%s233_s1 + $0x8] sm:$0xff]  ;;  %v153_v10 = vld [vmem:[%s233_s1] sm:$0xff] }
   0x2   :  { %v83_v1 = vld [vmem:[%s234_s3 + $0x10] sm:$0xf]  ;;  %v48_v2 = vunpack.c.l.b16 %v29_v0  ;;  %v156_v9 = vld [vmem:[%s234_s3 + $0x8] sm:$0xff]  ;;  %v155_v11 = vld [vmem:[%s234_s3] sm:$0xff] }
   0x3   :  { %v97_v3 = vunpack.c.l.b16 %v83_v1  ;;  %v152_v12 = vld [vmem:[%s236_s0] sm:$0xff] }
   0x4   :  { %v51_v4 = vpack.c.b16 %v48_v2, %v48_v2  ;;  %v157_v13 = vld [vmem:[%s235_s2] ss:$0 sm:$0xff] }
   0x5   :  { %v100_v5 = vpack.c.b16 %v97_v3, %v97_v3  ;;  %v158_v14 = vld [vmem:[%s237_s4] ss:$0 sm:$0xff] }
   0x6   :  { %v60_v6 = vsel %vm58_vm0, %v51_v4, 0 }
   0x7   :  { %v104_v7 = vsel %vm58_vm0, %v100_v5, 0  ;;  %67 = vmatpush.bf16.msra.mxu0 %v60_v6 }
   0x8   :  { %111 = vmatpush.bf16.msra.mxu1 %v104_v7 }
   0xb   :  { %68 = vmatpush.bf16.msra.mxu0 %v154_v8 }
   0xc   :  { %112 = vmatpush.bf16.msra.mxu1 %v156_v9 }
   0xf   :  { %69 = vmatpush.bf16.msra.mxu0 %v153_v10 }
  0x10   :  { %113 = vmatpush.bf16.msra.mxu1 %v155_v11 }
  0x12   :  { %142 = vmatmul.msk.bf16.vlgmr.msra.gmra.mxu0 %vm54_vm1, %v152_v12 }
  0x13   :  { %151 = vmatmul.msk.bf16.vlgmr.msra.gmra.mxu1 %vm54_vm1, %v152_v12 }
  0x8f   :  { %v71_v15 = vpop.f32.mrf.mxu0 }
  0x90   :  { %v115_v16 = vpop.f32.mrf.mxu1  ;;  %v72_v17 = vadd.f32 %v157_v13, %v71_v15 }
  0x91   :  { %v116_v18 = vadd.f32 %v158_v14, %v115_v16 }
  0x92   :  { %77 = vst.msk [vmem:[%s238_s5] sm:$0xff] %vm76_vm2, %v72_v17 }
  0x93   :  { %120 = vst.msk [vmem:[%s239_s6] sm:$0xff] %vm76_vm2, %v116_v18 }
  0x97   :  { %v73_v19 = vpop.f32.mrf.mxu0 }
  0x98   :  { %v117_v20 = vpop.f32.mrf.mxu1  ;;  %v74_v21 = vadd.f32 %v157_v13, %v73_v19 }
  0x99   :  { %v118_v22 = vadd.f32 %v158_v14, %v117_v20 }
  0x9a   :  { %78 = vst.msk [vmem:[%s238_s5 + $0x8] sm:$0xff] %vm76_vm2, %v74_v21 }
  0x9b   :  { %121 = vst.msk [vmem:[%s239_s6 + $0x8] sm:$0xff] %vm76_vm2, %v118_v22 }

// kernel: input_embedding_forward.3
= control target key start
LH: loop header
LB: loop body
LE: loop exit
PB: predicated region body
PF: predicated region fallthrough
CT: control target
= control target key end

     0   :  { %vm76_vm0 = vcmask 1041408   ;;  %vm72_vm1 = vcmask 162816   ;;  %vm513_vm2 = vcmask 130048   ;;  %s752_s1 = inlined_call_operand.vmem [shape: bf16[5,20,16], index: 1, kind: input, shape index: {}]   ;;  %s753_s0 = inlined_call_operand.vmem [shape: bf16[8,16,20], index: 0, kind: input, shape index: {}]   ;;  %s754_s2 = inlined_call_operand.vmem [shape: f32[1,16], index: 2, kind: input, shape index: {}]   ;;  %s755_s3 = inlined_call_operand.vmem [shape: f32[16,16], index: 3, kind: output, shape index: {}]  }
   0x1   :  { %v536_v0 = vld [vmem:[%s752_s1 + $0x14] sm:$0x3]  ;;  %v40_v1 = vld [vmem:[%s752_s1 + $0x8] sm:$0x3]  ;;  %v539_v2 = vld [vmem:[%s752_s1 + $0x20] sm:$0x3] }
   0x2   :  { %v68_v3 = vunpack.c.l.b16 %v536_v0  ;;  %v104_v4 = vunpack.c.l.b16 %v40_v1  ;;  %v138_v5 = vunpack.c.l.b16 %v539_v2  ;;  %v542_v6 = vld [vmem:[%s752_s1 + $0x2c] sm:$0x3]  ;;  %v545_v12 = vld [vmem:[%s752_s1 + $0x38] sm:$0x3]  ;;  %v626_v19 = vld [vmem:[%s752_s1] sm:$0xff] }
   0x3   :  { %v174_v7 = vunpack.c.l.b16 %v542_v6  ;;  %v210_v16 = vunpack.c.l.b16 %v545_v12  ;;  %v627_v18 = vld [vmem:[%s752_s1 + $0xc] sm:$0xff]  ;;  %v628_v20 = vld [vmem:[%s752_s1 + $0x18] sm:$0xff]  ;;  %v629_v21 = vld [vmem:[%s752_s1 + $0x24] sm:$0xff] }
   0x4   :  { %v70_v8 = vpack.c.b16 %v68_v3, %v68_v3  ;;  %v106_v9 = vpack.c.b16 %v104_v4, %v104_v4  ;;  %v140_v10 = vpack.c.b16 %v138_v5, %v138_v5  ;;  %v619_v23 = vld [vmem:[%s753_s0 + $0x8] sm:$0xff]  ;;  %v618_v24 = vld [vmem:[%s753_s0] sm:$0xff]  ;;  %v620_v26 = vld [vmem:[%s753_s0 + $0x10] sm:$0xff] }
   0x5   :  { %v176_v11 = vpack.c.b16 %v174_v7, %v174_v7  ;;  %v212_v22 = vpack.c.b16 %v210_v16, %v210_v16  ;;  %v621_v27 = vld [vmem:[%s753_s0 + $0x18] sm:$0xff]  ;;  %v630_v28 = vld [vmem:[%s752_s1 + $0x30] sm:$0xff]  ;;  %v622_v29 = vld [vmem:[%s753_s0 + $0x20] sm:$0xff] }
   0x6   :  { %v78_v13 = vsel %vm76_vm0, %v70_v8, 0  ;;  %v669_v14 = vsel %vm76_vm0, %v106_v9, 0  ;;  %v672_v15 = vsel %vm76_vm0, %v140_v10, 0  ;;  %v623_v30 = vld [vmem:[%s753_s0 + $0x28] sm:$0xff]  ;;  %v624_v31 = vld [vmem:[%s753_s0 + $0x30] sm:$0xff]  ;;  %v625_v32 = vld [vmem:[%s753_s0 + $0x38] sm:$0xff] }
   0x7   :  { %86 = vmatpush.bf16.msra.mxu0 %v78_v13  ;;  %120 = vmatpush.bf16.msra.mxu1 %v669_v14  ;;  %v182_v17 = vsel %vm76_vm0, %v176_v11, 0  ;;  %v218_v25 = vsel %vm76_vm0, %v212_v22, 0 }
   0x8   :  { %154 = vmatpush.bf16.msra.mxu2 %v672_v15  ;;  %190 = vmatpush.bf16.msra.mxu3 %v182_v17 }
   0xb   :  { %87 = vmatpush.bf16.msra.mxu0 %v627_v18  ;;  %121 = vmatpush.bf16.msra.mxu1 %v626_v19 }
   0xc   :  { %155 = vmatpush.bf16.msra.mxu2 %v628_v20  ;;  %191 = vmatpush.bf16.msra.mxu3 %v629_v21 }
   0xe   :  { %554 = vmatmul.msk.bf16.vlgmr.msra.gmra.mxu0 %vm72_vm1, %v619_v23  ;;  %563 = vmatmul.msk.bf16.vlgmr.msra.gmra.mxu1 %vm72_vm1, %v618_v24 }
   0xf   :  { %226 = vmatpush.bf16.msrb.mxu0 %v218_v25  ;;  %572 = vmatmul.msk.bf16.vlgmr.msra.gmra.mxu2 %vm72_vm1, %v620_v26 }
  0x10   :  { %263 = vmatpush.bf16.msrb.mxu2 %v669_v14  ;;  %581 = vmatmul.msk.bf16.vlgmr.msra.gmra.mxu3 %vm72_vm1, %v621_v27 }
  0x11   :  { %277 = vmatpush.bf16.msrb.mxu3 %v672_v15  ;;  %249 = vmatpush.bf16.msrb.mxu1 %v78_v13 }
  0x13   :  { %227 = vmatpush.bf16.msrb.mxu0 %v630_v28 }
  0x14   :  { %264 = vmatpush.bf16.msrb.mxu2 %v626_v19 }
  0x15   :  { %278 = vmatpush.bf16.msrb.mxu3 %v628_v20  ;;  %250 = vmatpush.bf16.msrb.mxu1 %v627_v18 }
  0x17   :  { %293 = vmatpush.bf16.msra.mxu0 %v182_v17 }
  0x18   :  { %339 = vmatpush.bf16.msra.mxu2 %v78_v13 }
  0x19   :  { %353 = vmatpush.bf16.msra.mxu3 %v669_v14  ;;  %317 = vmatpush.bf16.msra.mxu1 %v218_v25 }
  0x1b   :  { %294 = vmatpush.bf16.msra.mxu0 %v629_v21 }
  0x1c   :  { %340 = vmatpush.bf16.msra.mxu2 %v627_v18 }
  0x1d   :  { %354 = vmatpush.bf16.msra.mxu3 %v626_v19  ;;  %318 = vmatpush.bf16.msra.mxu1 %v630_v28 }
  0x1e   :  { %590 = vmatmul.msk.bf16.vlgmr.msrb.gmra.mxu0 %vm72_vm1, %v622_v29  ;;  %591 = vmatmul.msk.bf16.vlgmr.msrb.gmra.mxu1 %vm72_vm1, %v620_v26 }
  0x1f   :  { %592 = vmatmul.msk.bf16.vlgmr.msrb.gmra.mxu2 %vm72_vm1, %v619_v23  ;;  %367 = vmatpush.bf16.msrb.mxu0 %v672_v15 }
  0x20   :  { %593 = vmatmul.msk.bf16.vlgmr.msrb.gmra.mxu3 %vm72_vm1, %v621_v27  ;;  %407 = vmatpush.bf16.msrb.mxu2 %v218_v25 }
  0x21   :  { %429 = vmatpush.bf16.msrb.mxu3 %v78_v13  ;;  %383 = vmatpush.bf16.msrb.mxu1 %v182_v17 }
  0x23   :  { %368 = vmatpush.bf16.msrb.mxu0 %v628_v20 }
  0x24   :  { %408 = vmatpush.bf16.msrb.mxu2 %v630_v28 }
  0x25   :  { %430 = vmatpush.bf16.msrb.mxu3 %v627_v18  ;;  %384 = vmatpush.bf16.msrb.mxu1 %v629_v21 }
  0x2e   :  { %594 = vmatmul.msk.bf16.vlgmr.msra.gmra.mxu0 %vm72_vm1, %v622_v29  ;;  %599 = vmatmul.msk.bf16.vlgmr.msra.gmra.mxu1 %vm72_vm1, %v623_v30 }
  0x2f   :  { %600 = vmatmul.msk.bf16.vlgmr.msra.gmra.mxu2 %vm72_vm1, %v621_v27  ;;  %443 = vmatpush.bf16.msra.mxu0 %v669_v14 }
  0x30   :  { %601 = vmatmul.msk.bf16.vlgmr.msra.gmra.mxu3 %vm72_vm1, %v620_v26  ;;  %473 = vmatpush.bf16.msra.mxu2 %v182_v17 }
  0x31   :  { %497 = vmatpush.bf16.msra.mxu3 %v218_v25  ;;  %457 = vmatpush.bf16.msra.mxu1 %v672_v15  ;;  %v631_v15 = vld [vmem:[%s754_s2] ss:$0 sm:$0xff] }
  0x33   :  { %444 = vmatpush.bf16.msra.mxu0 %v626_v19 }
  0x34   :  { %474 = vmatpush.bf16.msra.mxu2 %v629_v21 }
  0x35   :  { %498 = vmatpush.bf16.msra.mxu3 %v630_v28  ;;  %458 = vmatpush.bf16.msra.mxu1 %v628_v20 }
  0x3e   :  { %602 = vmatmul.msk.bf16.vlgmr.msrb.gmra.mxu0 %vm72_vm1, %v622_v29  ;;  %603 = vmatmul.msk.bf16.vlgmr.msrb.gmra.mxu1 %vm72_vm1, %v623_v30 }
  0x3f   :  { %608 = vmatmul.msk.bf16.vlgmr.msrb.gmra.mxu2 %vm72_vm1, %v624_v31 }
  0x40   :  { %609 = vmatmul.msk.bf16.vlgmr.msrb.gmra.mxu3 %vm72_vm1, %v622_v29 }
  0x4e   :  { %610 = vmatmul.msk.bf16.vlgmr.msra.gmra.mxu0 %vm72_vm1, %v621_v27  ;;  %611 = vmatmul.msk.bf16.vlgmr.msra.gmra.mxu1 %vm72_vm1, %v623_v30 }
  0x4f   :  { %612 = vmatmul.msk.bf16.vlgmr.msra.gmra.mxu2 %vm72_vm1, %v624_v31 }
  0x50   :  { %617 = vmatmul.msk.bf16.vlgmr.msra.gmra.mxu3 %vm72_vm1, %v625_v32 }
  0x8b   :  { %v89_v33 = vpop.f32.mrf.mxu0  ;;  %v123_v34 = vpop.f32.mrf.mxu1 }
  0x8c   :  { %v124_v63 = vadd.f32 %v123_v34, %v89_v33 }
  0x92   :  { %v157_v35 = vpop.f32.mrf.mxu2 }
  0x93   :  { %v193_v36 = vpop.f32.mrf.mxu3  ;;  %v91_v37 = vpop.f32.mrf.mxu0  ;;  %v162_v3 = vadd.f32 %v157_v35, %v124_v63 }
  0x94   :  { %v125_v38 = vpop.f32.mrf.mxu1 }
  0x95   :  { %v198_v7 = vadd.f32 %v193_v36, %v162_v3  ;;  %v126_v13 = vadd.f32 %v125_v38, %v91_v37 }
  0x9a   :  { %v159_v39 = vpop.f32.mrf.mxu2 }
  0x9b   :  { %v195_v40 = vpop.f32.mrf.mxu3  ;;  %v229_v41 = vpop.f32.mrf.mxu0  ;;  %v163_v20 = vadd.f32 %v159_v39, %v126_v13 }
  0x9c   :  { %v252_v42 = vpop.f32.mrf.mxu1  ;;  %v234_v14 = vadd.f32 %v229_v41, %v198_v7 }
  0x9d   :  { %v199_v28 = vadd.f32 %v195_v40, %v163_v20 }
  0x9e   :  { %v239_v25 = vadd.f32 %v631_v15, %v234_v14 }
  0xa0   :  { %v241_v36 = vmax.f32 %v239_v25, 0.0 }
  0xa2   :  { %v266_v43 = vpop.f32.mrf.mxu2 }
  0xa3   :  { %v280_v44 = vpop.f32.mrf.mxu3  ;;  %v231_v45 = vpop.f32.mrf.mxu0  ;;  %v267_v59 = vadd.f32 %v266_v43, %v252_v42 }
  0xa4   :  { %v254_v46 = vpop.f32.mrf.mxu1  ;;  %v235_v37 = vadd.f32 %v231_v45, %v199_v28 }
  0xa5   :  { %v285_v1 = vadd.f32 %v280_v44, %v267_v59 }
  0xaa   :  { %v268_v47 = vpop.f32.mrf.mxu2 }
  0xab   :  { %v282_v48 = vpop.f32.mrf.mxu3  ;;  %v296_v49 = vpop.f32.mrf.mxu0  ;;  %v269_v6 = vadd.f32 %v268_v47, %v254_v46  ;;  %v240_v47 = vadd.f32 %v631_v15, %v235_v37 }
  0xac   :  { %v320_v50 = vpop.f32.mrf.mxu1  ;;  %v301_v4 = vadd.f32 %v296_v49, %v285_v1 }
  0xad   :  { %v286_v16 = vadd.f32 %v282_v48, %v269_v6  ;;  %v242_v45 = vmax.f32 %v240_v47, 0.0 }
  0xae   :  { %v325_v10 = vadd.f32 %v320_v50, %v301_v4 }
  0xb0   :  { %v327_v22 = vadd.f32 %v631_v15, %v325_v10 }
  0xb2   :  { %v342_v51 = vpop.f32.mrf.mxu2  ;;  %v329_v31 = vmax.f32 %v327_v22, 0.0 }
  0xb3   :  { %v356_v52 = vpop.f32.mrf.mxu3  ;;  %v298_v53 = vpop.f32.mrf.mxu0 }
  0xb4   :  { %v322_v54 = vpop.f32.mrf.mxu1  ;;  %v357_v2 = vadd.f32 %v356_v52, %v342_v51  ;;  %v302_v23 = vadd.f32 %v298_v53, %v286_v16  ;;  %v331_v43 = vmax.f32 %v241_v36, %v329_v31 }
  0xb6   :  { %v326_v32 = vadd.f32 %v322_v54, %v302_v23 }
  0xb8   :  { %v328_v44 = vadd.f32 %v631_v15, %v326_v32 }
  0xba   :  { %v344_v55 = vpop.f32.mrf.mxu2  ;;  %v330_v53 = vmax.f32 %v328_v44, 0.0 }
  0xbb   :  { %v358_v56 = vpop.f32.mrf.mxu3  ;;  %v370_v57 = vpop.f32.mrf.mxu0 }
  0xbc   :  { %v386_v58 = vpop.f32.mrf.mxu1  ;;  %v375_v5 = vadd.f32 %v370_v57, %v357_v2  ;;  %v359_v17 = vadd.f32 %v358_v56, %v344_v55  ;;  %v332_v59 = vmax.f32 %v242_v45, %v330_v53 }
  0xbe   :  { %v391_v11 = vadd.f32 %v386_v58, %v375_v5 }
  0xc2   :  { %v410_v60 = vpop.f32.mrf.mxu2 }
  0xc3   :  { %v432_v61 = vpop.f32.mrf.mxu3  ;;  %v372_v62 = vpop.f32.mrf.mxu0  ;;  %v415_v18 = vadd.f32 %v410_v60, %v391_v11 }
  0xc4   :  { %v388_v0 = vpop.f32.mrf.mxu1  ;;  %v376_v24 = vadd.f32 %v372_v62, %v359_v17 }
  0xc5   :  { %v417_v26 = vadd.f32 %v631_v15, %v415_v18 }
  0xc6   :  { %v392_v33 = vadd.f32 %v388_v0, %v376_v24 }
  0xc7   :  { %v419_v38 = vmax.f32 %v417_v26, 0.0 }
  0xc9   :  { %v421_v49 = vmax.f32 %v331_v43, %v419_v38 }
  0xca   :  { %v412_v8 = vpop.f32.mrf.mxu2 }
  0xcb   :  { %v434_v9 = vpop.f32.mrf.mxu3  ;;  %v446_v12 = vpop.f32.mrf.mxu0  ;;  %v416_v41 = vadd.f32 %v412_v8, %v392_v33 }
  0xcc   :  { %v447_v19 = vadd.f32 %v446_v12, %v432_v61  ;;  %v460_v21 = vpop.f32.mrf.mxu1 }
  0xcd   :  { %v418_v40 = vadd.f32 %v631_v15, %v416_v41 }
  0xce   :  { %v465_v27 = vadd.f32 %v460_v21, %v447_v19 }
  0xcf   :  { %v420_v57 = vmax.f32 %v418_v40, 0.0 }
  0xd1   :  { %v422_v61 = vmax.f32 %v332_v59, %v420_v57 }
  0xd2   :  { %v476_v29 = vpop.f32.mrf.mxu2 }
  0xd3   :  { %v500_v30 = vpop.f32.mrf.mxu3  ;;  %v481_v34 = vadd.f32 %v476_v29, %v465_v27  ;;  %v448_v35 = vpop.f32.mrf.mxu0 }
  0xd4   :  { %v449_v42 = vadd.f32 %v448_v35, %v434_v9  ;;  %v462_v48 = vpop.f32.mrf.mxu1 }
  0xd5   :  { %v505_v39 = vadd.f32 %v500_v30, %v481_v34 }
  0xd6   :  { %v466_v51 = vadd.f32 %v462_v48, %v449_v42 }
  0xd7   :  { %v507_v46 = vadd.f32 %v631_v15, %v505_v39 }
  0xd9   :  { %v509_v50 = vmax.f32 %v507_v46, 0.0 }
  0xda   :  { %v478_v52 = vpop.f32.mrf.mxu2 }
  0xdb   :  { %v511_v54 = vmax.f32 %v421_v49, %v509_v50  ;;  %v482_v55 = vadd.f32 %v478_v52, %v466_v51  ;;  %v502_v56 = vpop.f32.mrf.mxu3 }
  0xdd   :  { %514 = vst.msk [vmem:[%s755_s3] sm:$0xff] %vm513_vm2, %v511_v54  ;;  %v506_v58 = vadd.f32 %v502_v56, %v482_v55 }
  0xdf   :  { %v508_v60 = vadd.f32 %v631_v15, %v506_v58 }
  0xe1   :  { %v510_v62 = vmax.f32 %v508_v60, 0.0 }
  0xe3   :  { %v512_v63 = vmax.f32 %v422_v61, %v510_v62 }
  0xe5   :  { %515 = vst.msk [vmem:[%s755_s3 + $0x8] sm:$0xff] %vm513_vm2, %v512_v63 }

// kernel: input_embedding_forward.5
= control target key start
LH: loop header
LB: loop body
LE: loop exit
PB: predicated region body
PF: predicated region fallthrough
CT: control target
= control target key end

     0   :  { %s1178_s24 = smov 0   ;;  %s1349_s0 = inlined_call_operand.vmem [shape: f32[8,2,96], index: 0, kind: input, shape index: {}]   ;;  %s1350_s1 = inlined_call_operand.vmem [shape: f32[8,2,96], index: 1, kind: input, shape index: {}]   ;;  %s1351_s2 = inlined_call_operand.vmem [shape: f32[32,96], index: 2, kind: input, shape index: {}]   ;;  %s1352_s3 = inlined_call_operand.vmem [shape: f32[1,96], index: 3, kind: input, shape index: {}]   ;;  %s1353_s4 = inlined_call_operand.vmem [shape: f32[32,96], index: 4, kind: input, shape index: {}]   ;;  %s1354_s5 = inlined_call_operand.vmem [shape: f32[1,96], index: 5, kind: input, shape index: {}]   ;;  %s1355_s6 = inlined_call_operand.vmem [shape: f32[8,2,32], index: 6, kind: output, shape index: {0}]   ;;  %s1356_s7 = inlined_call_operand.vmem [shape: f32[8,2,32], index: 7, kind: output, shape index: {1}]  }
   0x1 LB: > { %s1020_s25 = sadd.s32 4294967295, %s1132_s24   ;;  %p1024_p0 = scmp.ge.s32.totalorder %s1132_s24, 1  ;;  %s1132_s24 = sphi %s1178_s24, %s18_s24  }
   0x2   : > { %p258_p1 = scmp.lt.s32.totalorder %s1132_s24, 3 }
   0x4   : > { %p259_p2 = pnand %p1024_p0, %p258_p1 }
   0x5   : > { %s1025_s26 = sshll.u32 (!%p259_p2), %s1020_s25, 2  ;;  %s308_s27 = ssub.s32 (!%p259_p2), 1, %s1020_s25 }
   0x6   : > { %262 = sbr.rel (%p259_p2) target bundleno = 2369 (0x941), region = 44  ;;  %p303_p3 = scmp.lt.s32.totalorder (!%p259_p2), %s1025_s26, 7 }
   0x7   : > { %s1027_s28 = sshll.u32 (!%p259_p2), %s308_s27, 2  ;;  %p1033_p5 = scmp.ne.s32.totalorder (!%p259_p2), %s1020_s25, 0 }
   0x8   : > { %p310_p4 = scmp.lt.s32.totalorder (!%p259_p2), %s1027_s28, 7 }
   0xb   : > { %s1358_s26 = smov (!%p303_p3, %s1025_s26), 7  ;;  %s1360_s28 = smov (!%p310_p4, %s1027_s28), 7 }
   0xc   : > { %s1026_s29 = sshll.u32 %s1358_s26, 1  ;;  %s1028_s10 = sshll.u32 %s1360_s28, 1 }
   0xd   : > { %s1189_s9 = scalar_lea.vmem %s1349_s0, %s1026_s29  ;;  %s1194_s13 = scalar_lea.vmem %s1350_s1, %s1028_s10 }
   0xe   : > { %s1199_s16 = scalar_lea.vmem %s1355_s6, %s1026_s29  ;;  %s1204_s19 = scalar_lea.vmem %s1356_s7, %s1028_s10 }
   0xf   : > { %333 = sbr.rel (%p1033_p5) target bundleno = 23 (0x17), region = 48 }
  0x14   : > { %vm334_vm0 = vcmask 254976   ;;  %v1134_v0 = vmov 0.0  }
  0x15   : > { %335 = vst.msk [vmem:[#allocation2] sm:$0x3] %vm334_vm0, %v1134_v0 }
  0x16   : > { %336 = vst.msk [vmem:[#allocation3] sm:$0x3] %vm334_vm0, %v1134_v0 }
  0x17 PF: > { %v340_v1 = vld [vmem:[%s1351_s2 + $0x18] sm:$0xff]  ;;  %v339_v3 = vld [vmem:[%s1351_s2 + $0x10] sm:$0xff]  ;;  %v338_v5 = vld [vmem:[%s1351_s2 + $0x8] sm:$0xff]  ;;  %vm353_vm1 = vcmask 261120   ;;  %s1135_s20 = smov 64   ;;  %s1136_s23 = smov 32  }
  0x18   : > { %v345_v2 = vld [vmem:[%s1353_s4 + $0x18] sm:$0xff]  ;;  %369 = vmatpush.msra.mxu0 %v340_v1  ;;  %v344_v4 = vld [vmem:[%s1353_s4 + $0x10] sm:$0xff]  ;;  %v343_v6 = vld [vmem:[%s1353_s4 + $0x8] sm:$0xff]  ;;  %517 = vmatpush.msra.mxu2 %v340_v1  ;;  %s1137_s26 = smov 96   ;;  %vm423_vm10 = vcmask 254976  }
  0x19   : > { %445 = vmatpush.msra.mxu1 %v345_v2  ;;  %586 = vmatpush.msra.mxu3 %v345_v2  ;;  %v337_v7 = vld [vmem:[%s1351_s2] sm:$0xff] }
  0x1a   : > { %370 = vmatpush.msra.mxu0 %v339_v3  ;;  %v342_v8 = vld [vmem:[%s1353_s4] sm:$0xff]  ;;  %518 = vmatpush.msra.mxu2 %v339_v3 }
  0x1b   : > { %446 = vmatpush.msra.mxu1 %v344_v4  ;;  %587 = vmatpush.msra.mxu3 %v344_v4  ;;  %v1241_v11 = vld [vmem:[%s1352_s3] ss:$0 sm:$0xff]  ;;  %v1036_v20 = vld [vmem:[%s1194_s13 + $0x6] sm:$0x3] }
  0x1c   : > { %371 = vmatpush.msra.mxu0 %v338_v5  ;;  %v1230_v9 = vld [vmem:[#allocation2] sm:$0x3]  ;;  %519 = vmatpush.msra.mxu2 %v338_v5 }
  0x1d   : > { %447 = vmatpush.msra.mxu1 %v343_v6  ;;  %v1232_v10 = vld [vmem:[#allocation3] sm:$0x3]  ;;  %588 = vmatpush.msra.mxu3 %v343_v6  ;;  %v1248_v14 = vld [vmem:[%s1354_s5] ss:$0 sm:$0xff] }
  0x1e   : > { %372 = vmatpush.msra.mxu0 %v337_v7  ;;  %520 = vmatpush.msra.mxu2 %v337_v7  ;;  %v349_v17 = vld [vmem:[%s1189_s9] sm:$0x3] }
  0x1f   : > { %448 = vmatpush.msra.mxu1 %v342_v8  ;;  %1034 = vmatmul.msk.f32.vlgmr.msra.gmra.mxu0 %vm353_vm1, %v1230_v9 }
  0x20   : > { %1037 = vmatmul.msk.f32.vlgmr.msra.gmra.mxu1 %vm353_vm1, %v1232_v10  ;;  %589 = vmatpush.msra.mxu3 %v342_v8 }
  0x21   : > { %655 = vmatpush.msrb.mxu0 %v340_v1  ;;  %724 = vmatpush.msrb.mxu1 %v345_v2 }
  0x22   : > { %793 = vmatpush.msrb.mxu2 %v340_v1  ;;  %861 = vmatpush.msrb.mxu3 %v345_v2 }
  0x23   : > { %656 = vmatpush.msrb.mxu0 %v339_v3  ;;  %725 = vmatpush.msrb.mxu1 %v344_v4 }
  0x24   : > { %794 = vmatpush.msrb.mxu2 %v339_v3  ;;  %862 = vmatpush.msrb.mxu3 %v344_v4 }
  0x25   : > { %657 = vmatpush.msrb.mxu0 %v338_v5  ;;  %726 = vmatpush.msrb.mxu1 %v343_v6 }
  0x26   : > { %795 = vmatpush.msrb.mxu2 %v338_v5  ;;  %863 = vmatpush.msrb.mxu3 %v343_v6 }
  0x27   : > { %658 = vmatpush.msrb.mxu0 %v337_v7  ;;  %727 = vmatpush.msrb.mxu1 %v342_v8 }
  0x28   : > { %796 = vmatpush.msrb.mxu2 %v337_v7  ;;  %864 = vmatpush.msrb.mxu3 %v342_v8 }
  0x9c   : > { %v374_v12 = vpop.f32.mrf.mxu0 }
  0x9d   : > { %v375_v13 = vadd.f32 %v1241_v11, %v374_v12  ;;  %v450_v15 = vpop.f32.mrf.mxu1  ;;  %v1040_v12 = vld [vmem:[%s1189_s9 + $0x2] sm:$0x3] }
  0x9e   : > { %v451_v16 = vadd.f32 %v1248_v14, %v450_v15 }
  0x9f   : > { %398 = vrot.lane.b32.xlu0 %v375_v13, %s1135_s20  ;;  %v377_v18 = vadd.f32 %v375_v13, %v349_v17 }
  0xa0   : > { %v453_v21 = vadd.f32 %v1036_v20, %v451_v16 }
  0xa1   : > { %v1035_v19 = vmul.f32 -1.442695, %v377_v18  ;;  %v1044_v18 = vld [vmem:[%s1194_s13 + $0x4] sm:$0x3] }
  0xa2   : > { %v1038_v22 = vmul.f32 -1.442695, %v453_v21 }
  0xa3   : > { %1078 = vpow2.f32 %v1035_v19 }
  0xa4   : > { %1080 = vpow2.f32 %v1038_v22 }
  0xa7   : > { %474 = vrot.lane.b32.xlu0 %v451_v16, %s1135_s20 }
  0xa9   : > { %v1079_v23 = vpop.eup %1078 }
  0xaa   : > { %v381_v24 = vadd.f32 1.0, %v1079_v23  ;;  %v1081_v25 = vpop.eup %1080 }
  0xab   : > { %v457_v26 = vadd.f32 1.0, %v1081_v25 }
  0xac   : > { %1082 = vrcp.f32 %v381_v24  ;;  %v393_v35 = vand.u32 2147483648, %v381_v24  ;;  %vm387_vm3 = vweird.f32 %v381_v24  ;;  %v391_v36 = vand.u32 2147483647, %v381_v24 }
  0xad   : > { %1084 = vrcp.f32 %v457_v26  ;;  %vm463_vm6 = vweird.f32 %v457_v26  ;;  %v469_v44 = vand.u32 2147483648, %v457_v26  ;;  %v467_v45 = vand.u32 2147483647, %v457_v26 }
  0xae   : > { %v394_v39 = vor.u32 1.1754944e-38, %v393_v35  ;;  %vm392_vm5 = vcmp.eq.f32.partialorder %v391_v36, 8.507059e+37 }
  0xaf   : > { %v470_v47 = vor.u32 1.1754944e-38, %v469_v44  ;;  %vm468_vm9 = vcmp.eq.f32.partialorder %v467_v45, 8.507059e+37 }
  0xb2   : > { %v1083_v27 = vpop.eup %1082 }
  0xb3   : > { %v383_v28 = vmul.f32 %v1083_v27, %v381_v24  ;;  %v1085_v30 = vpop.eup %1084  ;;  %vm388_vm2 = vweird.f32 %v1083_v27 }
  0xb4   : > { %v459_v32 = vmul.f32 %v1085_v30, %v457_v26  ;;  %vm389_vm4 = vmor %vm387_vm3, %vm388_vm2  ;;  %vm464_vm7 = vweird.f32 %v1085_v30 }
  0xb5   : > { %v384_v29 = vsub.f32 1.0, %v383_v28  ;;  %vm465_vm8 = vmor %vm463_vm6, %vm464_vm7 }
  0xb6   : > { %v460_v34 = vsub.f32 1.0, %v459_v32 }
  0xb7   : > { %v385_v31 = vmul.f32 %v1083_v27, %v384_v29 }
  0xb8   : > { %v461_v38 = vmul.f32 %v1085_v30, %v460_v34 }
  0xb9   : > { %v386_v33 = vadd.f32 %v1083_v27, %v385_v31 }
  0xba   : > { %v462_v43 = vadd.f32 %v1085_v30, %v461_v38 }
  0xbb   : > { %v390_v37 = vsel %vm389_vm4, %v1083_v27, %v386_v33 }
  0xbc   : > { %v395_v41 = vsel %vm392_vm5, %v394_v39, %v390_v37  ;;  %v466_v46 = vsel %vm465_vm8, %v1085_v30, %v462_v43 }
  0xbd   : > { %v471_v48 = vsel %vm468_vm9, %v470_v47, %v466_v46  ;;  %v408_v58 = vsub.f32 1.0, %v395_v41 }
  0xbe   : > { %v484_v0 = vsub.f32 1.0, %v471_v48 }
 0x111   : > { %v399_v40 = vpop.permute.xlu0 %398 }
 0x112   : > { %v401_v42 = vmul.f32 %v399_v40, %v395_v41 }
 0x114   : > { %403 = vrot.lane.b32.xlu1 %v401_v42, %s1135_s20 }
 0x119   : > { %v475_v49 = vpop.permute.xlu0 %474 }
 0x11a   : > { %v477_v50 = vmul.f32 %v475_v49, %v471_v48 }
 0x11c   : > { %479 = vrot.lane.b32.xlu1 %v477_v50, %s1135_s20 }
 0x124   : > { %490 = vrot.lane.b32.xlu1 %v1232_v10, %s1136_s23 }
 0x186   : > { %v404_v51 = vpop.permute.xlu1 %403 }
 0x187   : > { %v406_v52 = vadd.f32 %v404_v51, %v349_v17 }
 0x189   : > { %1086 = vtanh.f32 %v406_v52 }
 0x18e   : > { %v480_v53 = vpop.permute.xlu1 %479 }
 0x18f   : > { %v1087_v54 = vpop.eup %1086  ;;  %v482_v55 = vadd.f32 %v1036_v20, %v480_v53 }
 0x190   : > { %410 = vrot.lane.b32.xlu2 %v1087_v54, %s1137_s26 }
 0x191   : > { %1088 = vtanh.f32 %v482_v55 }
 0x196   : > { %v491_v63 = vpop.permute.xlu1 %490 }
 0x197   : > { %v1089_v56 = vpop.eup %1088  ;;  %v493_v2 = vmul.f32 %v491_v63, %v471_v48 }
 0x198   : > { %414 = vrot.lane.b32.xlu2 %v1230_v9, %s1136_s23  ;;  %486 = vrot.lane.b32.xlu0 %v1089_v56, %s1137_s26 }
 0x1ea   : > { %v411_v57 = vpop.permute.xlu2 %410 }
 0x1eb   : > { %v413_v60 = vmul.f32 %v411_v57, %v408_v58 }
 0x1f2   : > { %v415_v59 = vpop.permute.xlu2 %414 }
 0x1f3   : > { %v417_v61 = vmul.f32 %v415_v59, %v395_v41 }
 0x1f5   : > { %v1260_v62 = vadd.f32 %v417_v61, %v413_v60 }
 0x1f7   : > { %420 = vrot.lane.b32.xlu2 %v1260_v62, %s1137_s26 }
 0x20a   : > { %v487_v1 = vpop.permute.xlu0 %486 }
 0x20b   : > { %v489_v3 = vmul.f32 %v487_v1, %v484_v0 }
 0x20d   : > { %v1264_v4 = vadd.f32 %v493_v2, %v489_v3 }
 0x20f   : > { %496 = vrot.lane.b32.xlu0 %v1264_v4, %s1137_s26 }
 0x251   : > { %v421_v5 = vpop.permute.xlu2 %420 }
 0x252   : > { %424 = vst.msk [vmem:[%s1199_s16] sm:$0x3] %vm423_vm10, %v421_v5  ;;  %1041 = vmatmul.msk.f32.vlgmr.msra.gmra.mxu2 %vm353_vm1, %v421_v5  ;;  %v1048_v5 = vld [vmem:[%s1189_s9 + $0x4] sm:$0x3] }
 0x281   : > { %v497_v6 = vpop.permute.xlu0 %496 }
 0x282   : > { %1039 = vst.msk [vmem:[%s1204_s19 + $0x6] sm:$0x3] %vm423_vm10, %v497_v6  ;;  %1045 = vmatmul.msk.f32.vlgmr.msra.gmra.mxu3 %vm353_vm1, %v497_v6 }
 0x2d5   : > { %v522_v7 = vpop.f32.mrf.mxu2 }
 0x2d6   : > { %v523_v8 = vadd.f32 %v1241_v11, %v522_v7 }
 0x2d8   : > { %546 = vrot.lane.b32.xlu1 %v523_v8, %s1135_s20  ;;  %v525_v13 = vadd.f32 %v1040_v12, %v523_v8 }
 0x2da   : > { %v1042_v15 = vmul.f32 -1.442695, %v525_v13 }
 0x2dc   : > { %1090 = vpow2.f32 %v1042_v15 }
 0x2e2   : > { %v1091_v16 = vpop.eup %1090 }
 0x2e3   : > { %v529_v17 = vadd.f32 1.0, %v1091_v16 }
 0x2e5   : > { %1092 = vrcp.f32 %v529_v17  ;;  %v541_v28 = vand.u32 2147483648, %v529_v17  ;;  %vm535_vm12 = vweird.f32 %v529_v17  ;;  %v539_v29 = vand.u32 2147483647, %v529_v17 }
 0x2e7   : > { %v542_v31 = vor.u32 1.1754944e-38, %v541_v28  ;;  %vm540_vm14 = vcmp.eq.f32.partialorder %v539_v29, 8.507059e+37 }
 0x2eb   : > { %v1093_v20 = vpop.eup %1092 }
 0x2ec   : > { %v531_v22 = vmul.f32 %v1093_v20, %v529_v17  ;;  %vm536_vm11 = vweird.f32 %v1093_v20 }
 0x2ed   : > { %vm537_vm13 = vmor %vm535_vm12, %vm536_vm11 }
 0x2ee   : > { %v532_v23 = vsub.f32 1.0, %v531_v22 }
 0x2f0   : > { %v533_v25 = vmul.f32 %v1093_v20, %v532_v23 }
 0x2f2   : > { %v534_v27 = vadd.f32 %v1093_v20, %v533_v25 }
 0x2f4   : > { %v538_v30 = vsel %vm537_vm13, %v1093_v20, %v534_v27 }
 0x2f5   : > { %v543_v32 = vsel %vm540_vm14, %v542_v31, %v538_v30 }
 0x2f6   : > { %v556_v53 = vsub.f32 1.0, %v543_v32  ;;  %v562_v55 = vmul.f32 %v543_v32, %v1260_v62 }
 0x305   : > { %v591_v9 = vpop.f32.mrf.mxu3 }
 0x306   : > { %v592_v10 = vadd.f32 %v1248_v14, %v591_v9 }
 0x308   : > { %615 = vrot.lane.b32.xlu2 %v592_v10, %s1135_s20  ;;  %v594_v19 = vadd.f32 %v1044_v18, %v592_v10  ;;  %v1052_v10 = vld [vmem:[%s1194_s13 + $0x2] sm:$0x3] }
 0x30a   : > { %v1046_v21 = vmul.f32 -1.442695, %v594_v19 }
 0x30c   : > { %1094 = vpow2.f32 %v1046_v21 }
 0x312   : > { %v1095_v24 = vpop.eup %1094 }
 0x313   : > { %v598_v26 = vadd.f32 1.0, %v1095_v24 }
 0x315   : > { %1096 = vrcp.f32 %v598_v26  ;;  %v610_v40 = vand.u32 2147483648, %v598_v26  ;;  %vm604_vm0 = vweird.f32 %v598_v26  ;;  %v608_v41 = vand.u32 2147483647, %v598_v26 }
 0x317   : > { %v611_v43 = vor.u32 1.1754944e-38, %v610_v40  ;;  %vm609_vm3 = vcmp.eq.f32.partialorder %v608_v41, 8.507059e+37 }
 0x31b   : > { %v1097_v35 = vpop.eup %1096 }
 0x31c   : > { %v600_v36 = vmul.f32 %v1097_v35, %v598_v26  ;;  %vm605_vm15 = vweird.f32 %v1097_v35 }
 0x31d   : > { %vm606_vm2 = vmor %vm604_vm0, %vm605_vm15 }
 0x31e   : > { %v601_v37 = vsub.f32 1.0, %v600_v36 }
 0x320   : > { %v602_v38 = vmul.f32 %v1097_v35, %v601_v37 }
 0x322   : > { %v603_v39 = vadd.f32 %v1097_v35, %v602_v38 }
 0x324   : > { %v607_v42 = vsel %vm606_vm2, %v1097_v35, %v603_v39 }
 0x325   : > { %v612_v45 = vsel %vm609_vm3, %v611_v43, %v607_v42 }
 0x326   : > { %v625_v58 = vsub.f32 1.0, %v612_v45  ;;  %v631_v60 = vmul.f32 %v612_v45, %v1264_v4 }
 0x34a   : > { %v547_v33 = vpop.permute.xlu1 %546 }
 0x34b   : > { %v549_v34 = vmul.f32 %v547_v33, %v543_v32 }
 0x34d   : > { %551 = vrot.lane.b32.xlu0 %v549_v34, %s1135_s20 }
 0x362   : > { %v616_v44 = vpop.permute.xlu2 %615 }
 0x363   : > { %v618_v46 = vmul.f32 %v616_v44, %v612_v45 }
 0x365   : > { %620 = vrot.lane.b32.xlu1 %v618_v46, %s1135_s20 }
 0x3bf   : > { %v552_v47 = vpop.permute.xlu0 %551 }
 0x3c0   : > { %v554_v48 = vadd.f32 %v1040_v12, %v552_v47 }
 0x3c2   : > { %1098 = vtanh.f32 %v554_v48 }
 0x3c8   : > { %v1099_v49 = vpop.eup %1098 }
 0x3c9   : > { %558 = vrot.lane.b32.xlu2 %v1099_v49, %s1137_s26 }
 0x3d7   : > { %v621_v50 = vpop.permute.xlu1 %620 }
 0x3d8   : > { %v623_v51 = vadd.f32 %v1044_v18, %v621_v50 }
 0x3da   : > { %1100 = vtanh.f32 %v623_v51 }
 0x3e0   : > { %v1101_v52 = vpop.eup %1100 }
 0x3e1   : > { %627 = vrot.lane.b32.xlu0 %v1101_v52, %s1137_s26 }
 0x423   : > { %v559_v54 = vpop.permute.xlu2 %558 }
 0x424   : > { %v561_v56 = vmul.f32 %v559_v54, %v556_v53 }
 0x426   : > { %v1285_v57 = vadd.f32 %v562_v55, %v561_v56 }
 0x428   : > { %565 = vrot.lane.b32.xlu1 %v1285_v57, %s1137_s26 }
 0x453   : > { %v628_v59 = vpop.permute.xlu0 %627 }
 0x454   : > { %v630_v61 = vmul.f32 %v628_v59, %v625_v58 }
 0x456   : > { %v1290_v63 = vadd.f32 %v631_v60, %v630_v61 }
 0x458   : > { %634 = vrot.lane.b32.xlu2 %v1290_v63, %s1137_s26 }
 0x49a   : > { %v566_v0 = vpop.permute.xlu1 %565 }
 0x49b   : > { %1043 = vst.msk [vmem:[%s1199_s16 + $0x2] sm:$0x3] %vm423_vm10, %v566_v0  ;;  %1049 = vmatmul.msk.f32.vlgmr.msrb.gmra.mxu0 %vm353_vm1, %v566_v0  ;;  %v1056_v0 = vld [vmem:[%s1189_s9 + $0x6] sm:$0x3] }
 0x4b2   : > { %v635_v62 = vpop.permute.xlu2 %634 }
 0x4b3   : > { %1047 = vst.msk [vmem:[%s1204_s19 + $0x4] sm:$0x3] %vm423_vm10, %v635_v62  ;;  %1053 = vmatmul.msk.f32.vlgmr.msrb.gmra.mxu1 %vm353_vm1, %v635_v62 }
 0x518   : > { %v660_v1 = vpop.f32.mrf.mxu0 }
 0x519   : > { %v661_v2 = vadd.f32 %v1241_v11, %v660_v1 }
 0x51b   : > { %684 = vrot.lane.b32.xlu0 %v661_v2, %s1135_s20  ;;  %v663_v6 = vadd.f32 %v1048_v5, %v661_v2 }
 0x51d   : > { %v1050_v7 = vmul.f32 -1.442695, %v663_v6 }
 0x51f   : > { %1102 = vpow2.f32 %v1050_v7 }
 0x525   : > { %v1103_v8 = vpop.eup %1102 }
 0x526   : > { %v667_v9 = vadd.f32 1.0, %v1103_v8 }
 0x528   : > { %1104 = vrcp.f32 %v667_v9  ;;  %v679_v22 = vand.u32 2147483648, %v667_v9  ;;  %vm673_vm5 = vweird.f32 %v667_v9  ;;  %v677_v23 = vand.u32 2147483647, %v667_v9 }
 0x52a   : > { %v680_v25 = vor.u32 1.1754944e-38, %v679_v22  ;;  %vm678_vm7 = vcmp.eq.f32.partialorder %v677_v23, 8.507059e+37 }
 0x52e   : > { %v1105_v13 = vpop.eup %1104 }
 0x52f   : > { %v669_v16 = vmul.f32 %v1105_v13, %v667_v9  ;;  %vm674_vm4 = vweird.f32 %v1105_v13 }
 0x530   : > { %v729_v3 = vpop.f32.mrf.mxu1  ;;  %vm675_vm6 = vmor %vm673_vm5, %vm674_vm4 }
 0x531   : > { %v730_v4 = vadd.f32 %v1248_v14, %v729_v3  ;;  %v670_v17 = vsub.f32 1.0, %v669_v16 }
 0x533   : > { %753 = vrot.lane.b32.xlu1 %v730_v4, %s1135_s20  ;;  %v732_v12 = vadd.f32 %v1052_v10, %v730_v4  ;;  %v671_v19 = vmul.f32 %v1105_v13, %v670_v17 }
 0x535   : > { %v1054_v15 = vmul.f32 -1.442695, %v732_v12  ;;  %v672_v21 = vadd.f32 %v1105_v13, %v671_v19 }
 0x537   : > { %1106 = vpow2.f32 %v1054_v15  ;;  %v676_v24 = vsel %vm675_vm6, %v1105_v13, %v672_v21 }
 0x538   : > { %v681_v27 = vsel %vm678_vm7, %v680_v25, %v676_v24 }
 0x539   : > { %v694_v47 = vsub.f32 1.0, %v681_v27  ;;  %v700_v49 = vmul.f32 %v681_v27, %v1285_v57 }
 0x53d   : > { %v1107_v18 = vpop.eup %1106 }
 0x53e   : > { %v736_v20 = vadd.f32 1.0, %v1107_v18 }
 0x540   : > { %1108 = vrcp.f32 %v736_v20  ;;  %v748_v34 = vand.u32 2147483648, %v736_v20  ;;  %vm742_vm9 = vweird.f32 %v736_v20  ;;  %v746_v35 = vand.u32 2147483647, %v736_v20 }
 0x542   : > { %v749_v37 = vor.u32 1.1754944e-38, %v748_v34  ;;  %vm747_vm12 = vcmp.eq.f32.partialorder %v746_v35, 8.507059e+37 }
 0x546   : > { %v1109_v29 = vpop.eup %1108 }
 0x547   : > { %v738_v30 = vmul.f32 %v1109_v29, %v736_v20  ;;  %vm743_vm8 = vweird.f32 %v1109_v29 }
 0x548   : > { %vm744_vm11 = vmor %vm742_vm9, %vm743_vm8 }
 0x549   : > { %v739_v31 = vsub.f32 1.0, %v738_v30 }
 0x54b   : > { %v740_v32 = vmul.f32 %v1109_v29, %v739_v31 }
 0x54d   : > { %v741_v33 = vadd.f32 %v1109_v29, %v740_v32 }
 0x54f   : > { %v745_v36 = vsel %vm744_vm11, %v1109_v29, %v741_v33 }
 0x550   : > { %v750_v38 = vsel %vm747_vm12, %v749_v37, %v745_v36 }
 0x551   : > { %v763_v52 = vsub.f32 1.0, %v750_v38  ;;  %v769_v54 = vmul.f32 %v750_v38, %v1290_v63 }
 0x58d   : > { %v685_v26 = vpop.permute.xlu0 %684 }
 0x58e   : > { %v687_v28 = vmul.f32 %v685_v26, %v681_v27 }
 0x590   : > { %689 = vrot.lane.b32.xlu2 %v687_v28, %s1135_s20 }
 0x5a5   : > { %v754_v39 = vpop.permute.xlu1 %753 }
 0x5a6   : > { %v756_v40 = vmul.f32 %v754_v39, %v750_v38 }
 0x5a8   : > { %758 = vrot.lane.b32.xlu0 %v756_v40, %s1135_s20 }
 0x5ea   : > { %v690_v41 = vpop.permute.xlu2 %689 }
 0x5eb   : > { %v692_v42 = vadd.f32 %v1048_v5, %v690_v41 }
 0x5ed   : > { %1110 = vtanh.f32 %v692_v42 }
 0x5f3   : > { %v1111_v43 = vpop.eup %1110 }
 0x5f4   : > { %696 = vrot.lane.b32.xlu1 %v1111_v43, %s1137_s26 }
 0x61a   : > { %v759_v44 = vpop.permute.xlu0 %758 }
 0x61b   : > { %v761_v45 = vadd.f32 %v1052_v10, %v759_v44 }
 0x61d   : > { %1112 = vtanh.f32 %v761_v45 }
 0x623   : > { %v1113_v46 = vpop.eup %1112 }
 0x624   : > { %765 = vrot.lane.b32.xlu2 %v1113_v46, %s1137_s26 }
 0x666   : > { %v697_v48 = vpop.permute.xlu1 %696 }
 0x667   : > { %v699_v50 = vmul.f32 %v697_v48, %v694_v47 }
 0x669   : > { %v1311_v51 = vadd.f32 %v700_v49, %v699_v50 }
 0x66b   : > { %703 = vrot.lane.b32.xlu0 %v1311_v51, %s1137_s26 }
 0x67e   : > { %v766_v53 = vpop.permute.xlu2 %765 }
 0x67f   : > { %v768_v55 = vmul.f32 %v766_v53, %v763_v52 }
 0x681   : > { %v1316_v56 = vadd.f32 %v769_v54, %v768_v55 }
 0x683   : > { %772 = vrot.lane.b32.xlu1 %v1316_v56, %s1137_s26 }
 0x6dd   : > { %v704_v58 = vpop.permute.xlu0 %703 }
 0x6de   : > { %1051 = vst.msk [vmem:[%s1199_s16 + $0x4] sm:$0x3] %vm423_vm10, %v704_v58  ;;  %1057 = vmatmul.msk.f32.vlgmr.msrb.gmra.mxu2 %vm353_vm1, %v704_v58 }
 0x6f5   : > { %v773_v57 = vpop.permute.xlu1 %772 }
 0x6f6   : > { %1055 = vst.msk [vmem:[%s1204_s19 + $0x2] sm:$0x3] %vm423_vm10, %v773_v57  ;;  %1060 = vmatmul.msk.f32.vlgmr.msrb.gmra.mxu3 %vm353_vm1, %v773_v57 }
 0x761   : > { %v798_v59 = vpop.f32.mrf.mxu2 }
 0x762   : > { %v799_v60 = vadd.f32 %v1241_v11, %v798_v59 }
 0x764   : > { %822 = vrot.lane.b32.xlu2 %v799_v60, %s1135_s20  ;;  %v801_v62 = vadd.f32 %v1056_v0, %v799_v60 }
 0x766   : > { %v1058_v1 = vmul.f32 -1.442695, %v801_v62 }
 0x768   : > { %1114 = vpow2.f32 %v1058_v1 }
 0x76e   : > { %v1115_v2 = vpop.eup %1114 }
 0x76f   : > { %v805_v3 = vadd.f32 1.0, %v1115_v2 }
 0x771   : > { %1116 = vrcp.f32 %v805_v3  ;;  %v817_v8 = vand.u32 2147483648, %v805_v3  ;;  %vm811_vm13 = vweird.f32 %v805_v3  ;;  %v815_v9 = vand.u32 2147483647, %v805_v3 }
 0x773   : > { %v818_v12 = vor.u32 1.1754944e-38, %v817_v8  ;;  %vm816_vm15 = vcmp.eq.f32.partialorder %v815_v9, 8.507059e+37 }
 0x777   : > { %v1117_v4 = vpop.eup %1116 }
 0x778   : > { %v807_v5 = vmul.f32 %v1117_v4, %v805_v3  ;;  %vm812_vm1 = vweird.f32 %v1117_v4 }
 0x779   : > { %v866_v61 = vpop.f32.mrf.mxu3  ;;  %vm813_vm14 = vmor %vm811_vm13, %vm812_vm1 }
 0x77a   : > { %v867_v63 = vadd.f32 %v1248_v14, %v866_v61  ;;  %v808_v6 = vsub.f32 1.0, %v807_v5  ;;  %v846_v14 = vld [vmem:[%s1194_s13] sm:$0x3] }
 0x77c   : > { %890 = vrot.lane.b32.xlu0 %v867_v63, %s1135_s20  ;;  %v809_v7 = vmul.f32 %v1117_v4, %v808_v6  ;;  %v869_v13 = vadd.f32 %v867_v63, %v846_v14 }
 0x77e   : > { %v810_v11 = vadd.f32 %v1117_v4, %v809_v7  ;;  %v1061_v18 = vmul.f32 -1.442695, %v869_v13 }
 0x780   : > { %v814_v10 = vsel %vm813_vm14, %v1117_v4, %v810_v11  ;;  %1118 = vpow2.f32 %v1061_v18 }
 0x781   : > { %v819_v16 = vsel %vm816_vm15, %v818_v12, %v814_v10 }
 0x782   : > { %v832_v39 = vsub.f32 1.0, %v819_v16  ;;  %v838_v41 = vmul.f32 %v819_v16, %v1311_v51 }
 0x786   : > { %v1119_v19 = vpop.eup %1118 }
 0x787   : > { %v873_v20 = vadd.f32 1.0, %v1119_v19 }
 0x789   : > { %1120 = vrcp.f32 %v873_v20  ;;  %v885_v26 = vand.u32 2147483648, %v873_v20  ;;  %vm879_vm2 = vweird.f32 %v873_v20  ;;  %v883_v27 = vand.u32 2147483647, %v873_v20 }
 0x78b   : > { %v886_v29 = vor.u32 1.1754944e-38, %v885_v26  ;;  %vm884_vm4 = vcmp.eq.f32.partialorder %v883_v27, 8.507059e+37 }
 0x78f   : > { %v1121_v21 = vpop.eup %1120 }
 0x790   : > { %v875_v22 = vmul.f32 %v1121_v21, %v873_v20  ;;  %vm880_vm0 = vweird.f32 %v1121_v21 }
 0x791   : > { %vm881_vm3 = vmor %vm879_vm2, %vm880_vm0 }
 0x792   : > { %v876_v23 = vsub.f32 1.0, %v875_v22 }
 0x794   : > { %v877_v24 = vmul.f32 %v1121_v21, %v876_v23 }
 0x796   : > { %v878_v25 = vadd.f32 %v1121_v21, %v877_v24 }
 0x798   : > { %v882_v28 = vsel %vm881_vm3, %v1121_v21, %v878_v25 }
 0x799   : > { %v887_v31 = vsel %vm884_vm4, %v886_v29, %v882_v28 }
 0x79a   : > { %v900_v44 = vsub.f32 1.0, %v887_v31  ;;  %v906_v46 = vmul.f32 %v887_v31, %v1316_v56 }
 0x7be   : > { %v823_v15 = vpop.permute.xlu2 %822 }
 0x7bf   : > { %v825_v17 = vmul.f32 %v823_v15, %v819_v16 }
 0x7c1   : > { %827 = vrot.lane.b32.xlu1 %v825_v17, %s1135_s20 }
 0x7ee   : > { %v891_v30 = vpop.permute.xlu0 %890 }
 0x7ef   : > { %v893_v32 = vmul.f32 %v891_v30, %v887_v31 }
 0x7f1   : > { %895 = vrot.lane.b32.xlu2 %v893_v32, %s1135_s20 }
 0x833   : > { %v828_v33 = vpop.permute.xlu1 %827 }
 0x834   : > { %v830_v34 = vadd.f32 %v1056_v0, %v828_v33 }
 0x836   : > { %1122 = vtanh.f32 %v830_v34 }
 0x83c   : > { %v1123_v35 = vpop.eup %1122 }
 0x83d   : > { %834 = vrot.lane.b32.xlu0 %v1123_v35, %s1137_s26 }
 0x84b   : > { %v896_v36 = vpop.permute.xlu2 %895 }
 0x84c   : > { %v898_v37 = vadd.f32 %v896_v36, %v846_v14 }
 0x84e   : > { %1124 = vtanh.f32 %v898_v37 }
 0x854   : > { %v1125_v38 = vpop.eup %1124 }
 0x855   : > { %902 = vrot.lane.b32.xlu1 %v1125_v38, %s1137_s26 }
 0x8af   : > { %v835_v40 = vpop.permute.xlu0 %834 }
 0x8b0   : > { %v837_v42 = vmul.f32 %v835_v40, %v832_v39 }
 0x8b2   : > { %v839_v43 = vadd.f32 %v838_v41, %v837_v42 }
 0x8b4   : > { %841 = vrot.lane.b32.xlu2 %v839_v43, %s1137_s26 }
 0x8c7   : > { %v903_v45 = vpop.permute.xlu1 %902 }
 0x8c8   : > { %v905_v47 = vmul.f32 %v903_v45, %v900_v44 }
 0x8ca   : > { %v907_v48 = vadd.f32 %v906_v46, %v905_v47 }
 0x8cc   : > { %909 = vrot.lane.b32.xlu0 %v907_v48, %s1137_s26 }
 0x90e   : > { %v842_v49 = vpop.permute.xlu2 %841 }
 0x90f   : > { %1059 = vst.msk [vmem:[%s1199_s16 + $0x6] sm:$0x3] %vm423_vm10, %v842_v49 }
 0x910   : > { %913 = vst.msk [vmem:[#allocation2] sm:$0x3] %vm423_vm10, %v842_v49 }
 0x93e   : > { %v910_v50 = vpop.permute.xlu0 %909 }
 0x93f   : > { %912 = vst.msk [vmem:[%s1204_s19] sm:$0x3] %vm423_vm10, %v910_v50 }
 0x940   : > { %914 = vst.msk [vmem:[#allocation3] sm:$0x3] %vm423_vm10, %v910_v50 }
 0x941 PF: > { %s18_s24 = sadd.s32 1, %s1132_s24  }
 0x942   : > { %p15_p6 = scmp.ge.s32.totalorder %s18_s24, 4  }
 0x944   :  { %17 = sbr.rel (!%p15_p6) target bundleno = 1 (0x1), region = 105 }

</bundles_post_ra>
